<compile_context>
chip_gen: v7x
topology: tpu7x:2x2x1
jax: 0.10.0
libtpu: 0.0.40
codegen_flags: <defaults>
</compile_context>

<pallas_src>
import jax
import jax.numpy as jnp
from jax.experimental import pallas as pl
from jax.experimental.pallas import tpu as pltpu

EPS = 1e-5  # nn.LayerNorm default


def _round_up(v, m):
    return (v + m - 1) // m * m


def _pick_tn(H, tn_req):
    """Largest multiple of 128 that divides H and is <= tn_req, else full H."""
    best = H
    t = 128
    while t <= min(tn_req, H):
        if H % t == 0:
            best = t
        t += 128
    return best


def _layernorm_f32(x_raw, g, b):
    """LayerNorm over the last dim; stats in f32, single elementwise pass."""
    x = x_raw.astype(jnp.float32)
    mean = jnp.mean(x, axis=-1, keepdims=True)
    m2 = jnp.mean(x * x, axis=-1, keepdims=True)
    var = jnp.maximum(m2 - mean * mean, 0.0)      # biased variance (torch default)
    xhat = (x - mean) * jax.lax.rsqrt(var + EPS)
    return xhat * g.astype(jnp.float32) + b.astype(jnp.float32)


# ---------------------------------------------------------------------------
# Kernel A: weight-resident path (full (D, H) weight fits in VMEM; 1-D grid).
# ---------------------------------------------------------------------------
def prenorm_linear_fused_kernel(x_ref, g_ref, b_ref, w_ref, bias_ref, o_ref):
    """x:(tm,D) bf16, g/b:(1,D) f32, w:(D,H) bf16, bias:(1,H) f32, o:(tm,H)."""
    y = _layernorm_f32(x_ref[...], g_ref[...], b_ref[...]).astype(w_ref.dtype)
    out = jnp.dot(y, w_ref[...], preferred_element_type=jnp.float32)
    o_ref[...] = (out + bias_ref[...].astype(jnp.float32)).astype(o_ref.dtype)


# ---------------------------------------------------------------------------
# Kernel B: hidden-tiled path (2-D grid over (token tiles, hidden tiles)).
# ---------------------------------------------------------------------------
def prenorm_linear_tiled_kernel(x_ref, g_ref, b_ref, w_ref, bias_ref, o_ref, y_ref):
    """One (tm, tn) output tile of Linear(LayerNorm(x)).

    x_ref    : (tm, D)  bf16 token tile (reused across all j)
    g_ref    : (1, D)   LayerNorm gamma (f32)
    b_ref    : (1, D)   LayerNorm beta  (f32)
    w_ref    : (D, tn)  bf16 Linear weight tile (H-tiled on grid axis j)
    bias_ref : (1, tn)  Linear bias tile (f32, H-tiled on grid axis j)
    o_ref    : (tm, tn) output tile
    y_ref    : (tm, D)  bf16 VMEM scratch: normalized+affine activations.

    CORRECTNESS NOTE: y_ref is written only at j == 0 and reused for j > 0.
    This relies on the j axis being the innermost, sequential ("arbitrary")
    grid axis and the parallel i axis being sharded by whole-i ranges per
    core.  Do NOT reorder the grid or mark j as "parallel".
    """
    j = pl.program_id(1)

    @pl.when(j == 0)
    def _():
        y = _layernorm_f32(x_ref[...], g_ref[...], b_ref[...])
        y_ref[...] = y.astype(y_ref.dtype)   # cast once to bf16 for the MXU

    out = jnp.dot(y_ref[...], w_ref[...], preferred_element_type=jnp.float32)
    out = out + bias_ref[...].astype(jnp.float32)
    o_ref[...] = out.astype(o_ref.dtype)


def prenorm_linear(x, gamma, beta, w, bias, *, tm=512, tn=512,
                   out_dtype=jnp.bfloat16, weight_resident_bytes=8 * 2**20):
    """x: (B, S, D); gamma/beta: (D,); w: (D, H); bias: (H,) -> (B, S, H)."""
    B, S, D = x.shape
    H = w.shape[1]
    N = B * S

    # --- operand dtypes: bf16 activation/weight streaming, f32 LN params/bias ---
    x2 = x.reshape(N, D).astype(jnp.bfloat16)
    w_bf16 = w.astype(jnp.bfloat16)
    g2 = gamma.reshape(1, D).astype(jnp.float32)
    b2 = beta.reshape(1, D).astype(jnp.float32)
    bias2 = bias.reshape(1, H).astype(jnp.float32)

    # --- token tile: multiple of 128; keep >= 2 tiles when N allows (megacore) ---
    tm = _round_up(min(tm, max(N, 1)), 128)
    if N > 128:
        tm = min(tm, _round_up((N + 1) // 2, 128))
    tm = max(tm, 128)

    # --- path selection: keep full weight resident when it is small ---
    resident = (D * H * 2) <= weight_resident_bytes
    tn = H if resident else _pick_tn(H, tn)
    assert H % tn == 0

    # --- VMEM budget: ~75% of physical (96 MiB on v5e/v6e, ~48 MiB on v7x) ---
    try:
        info = pltpu.get_tpu_info()
        phys_vmem = int(getattr(info, "vmem_capacity_bytes", 64 * 2**20))
    except Exception:
        phys_vmem = 64 * 2**20
    vmem_cap = (phys_vmem * 3) // 4

    out_itemsize = jnp.dtype(out_dtype).itemsize

    def vmem_est(tm_):
        return (2 * (tm_ * D * 2                      # bf16 x tile (double-buffered)
                     + D * tn * 2                     # bf16 weight tile
                     + tm_ * tn * out_itemsize        # output tile
                     + 2 * D * 4 + tn * 4)            # gamma/beta/bias tiles
                + (0 if resident else tm_ * D * 2))   # LN scratch (bf16)

    while tm > 128 and 2 * vmem_est(tm) > vmem_cap:
        tm = max(128, _round_up(tm // 2, 128))

    # Pad the token axis so the grid tiles evenly.  Padded zero rows produce
    # var=0 -> y=beta -> beta@W+bias; harmless because they are sliced off below.
    n_pad = _round_up(N, tm)
    if n_pad != N:
        x2 = jnp.pad(x2, ((0, n_pad - N), (0, 0)))

    vmem_limit = int(min(vmem_cap, max(32 * 2**20, 2 * vmem_est(tm))))

    weight_reads = 1 if resident else (n_pad // tm)
    cost = pl.CostEstimate(
        flops=2 * n_pad * D * H + 6 * n_pad * D,
        transcendentals=0,
        bytes_accessed=(n_pad * D * 2 + weight_reads * D * H * 2
                        + n_pad * H * out_itemsize + (2 * D + H) * 4),
    )

    if resident:
        out = pl.pallas_call(
            prenorm_linear_fused_kernel,
            out_shape=jax.ShapeDtypeStruct((n_pad, H), out_dtype),
            grid=(n_pad // tm,),
            in_specs=[
                pl.BlockSpec((tm, D), lambda i: (i, 0)),   # x tile
                pl.BlockSpec((1, D), lambda i: (0, 0)),    # gamma
                pl.BlockSpec((1, D), lambda i: (0, 0)),    # beta
                pl.BlockSpec((D, H), lambda i: (0, 0)),    # full weight, resident
                pl.BlockSpec((1, H), lambda i: (0, 0)),    # bias
            ],
            out_specs=pl.BlockSpec((tm, H), lambda i: (i, 0)),
            compiler_params=pltpu.CompilerParams(
                dimension_semantics=("parallel",),
                vmem_limit_bytes=vmem_limit,
            ),
            cost_estimate=cost,
        )(x2, g2, b2, w_bf16, bias2)
    else:
        out = pl.pallas_call(
            prenorm_linear_tiled_kernel,
            out_shape=jax.ShapeDtypeStruct((n_pad, H), out_dtype),
            grid=(n_pad // tm, H // tn),
            in_specs=[
                pl.BlockSpec((tm, D), lambda i, j: (i, 0)),    # x tile (reused over j)
                pl.BlockSpec((1, D), lambda i, j: (0, 0)),     # gamma (constant)
                pl.BlockSpec((1, D), lambda i, j: (0, 0)),     # beta (constant)
                pl.BlockSpec((D, tn), lambda i, j: (0, j)),    # weight, H-tiled
                pl.BlockSpec((1, tn), lambda i, j: (0, j)),    # bias, H-tiled
            ],
            out_specs=pl.BlockSpec((tm, tn), lambda i, j: (i, j)),
            scratch_shapes=[pltpu.VMEM((tm, D), jnp.bfloat16)],
            compiler_params=pltpu.CompilerParams(
                dimension_semantics=("parallel", "arbitrary"),
                vmem_limit_bytes=vmem_limit,
            ),
            cost_estimate=cost,
        )(x2, g2, b2, w_bf16, bias2)

    if n_pad != N:
        out = out[:N]
    return out.reshape(B, S, H)


def prenorm_linear_ref(x, gamma, beta, w, bias, out_dtype=jnp.bfloat16):
    """Pure-JAX reference with the same bf16 streaming / f32-stats contract."""
    xf = x.astype(jnp.bfloat16).astype(jnp.float32)
    mean = jnp.mean(xf, axis=-1, keepdims=True)
    var = jnp.maximum(jnp.mean(xf * xf, axis=-1, keepdims=True) - mean * mean, 0.0)
    y = (xf - mean) * jax.lax.rsqrt(var + EPS) * gamma + beta
    out = jnp.dot(y.astype(jnp.bfloat16), w.astype(jnp.bfloat16),
                  preferred_element_type=jnp.float32) + bias
    return out.astype(out_dtype)


if __name__ == "__main__":
    # Small demo shapes, lane-dense (multiples of 128) per the perf review.
    B, S, D, H = 2, 128, 256, 512

    key = jax.random.PRNGKey(0)
    kx, kg, kb, kw, kbias = jax.random.split(key, 5)

    x = jax.random.normal(kx, (B, S, D), dtype=jnp.float32)
    gamma = 1.0 + 0.1 * jax.random.normal(kg, (D,), dtype=jnp.float32)
    beta = 0.1 * jax.random.normal(kb, (D,), dtype=jnp.float32)
    w = jax.random.normal(kw, (D, H), dtype=jnp.float32) * (1.0 / jnp.sqrt(D))
    bias = 0.01 * jax.random.normal(kbias, (H,), dtype=jnp.float32)

    ref = prenorm_linear_ref(x, gamma, beta, w, bias,
                             out_dtype=jnp.float32)

    # Path 1: weight-resident fused kernel (default for small D*H).
    out_a = prenorm_linear(x, gamma, beta, w, bias)
    out_a = jax.block_until_ready(out_a)
    assert out_a.shape == (B, S, H)
    assert jnp.allclose(out_a.astype(jnp.float32), ref, atol=2e-2, rtol=2e-2), \
        "mismatch vs reference (resident path)"

    # Path 2: hidden-tiled kernel (forced by weight_resident_bytes=0) so the
    # 2-D grid + LN scratch path is also compiled and checked.
    out_b = prenorm_linear(x, gamma, beta, w, bias, tn=256,
                           weight_resident_bytes=0)
    out_b = jax.block_until_ready(out_b)
    assert out_b.shape == (B, S, H)
    assert jnp.allclose(out_b.astype(jnp.float32), ref, atol=2e-2, rtol=2e-2), \
        "mismatch vs reference (tiled path)"

    # TODO(synk): the rest of Net (per-graph dynamic slicing, sparse adj build,
    # GNN_LinearAttn, grouped FFN bmm, dropout, fusion MLP, predictor head)
    # stays in plain JAX / host code.
    print("KERNEL_OK")
</pallas_src>

<mosaic_0001>
module attributes {stable_mosaic.version = 11 : i64} {
  func.func @prenorm_linear_fused_kernel(%arg0: i32, %arg1: memref<128x256xbf16, #tpu.memory_space<vmem>>, %arg2: memref<1x256xf32, #tpu.memory_space<vmem>>, %arg3: memref<1x256xf32, #tpu.memory_space<vmem>>, %arg4: memref<256x512xbf16, #tpu.memory_space<vmem>>, %arg5: memref<1x512xf32, #tpu.memory_space<vmem>>, %arg6: memref<128x512xbf16, #tpu.memory_space<vmem>>) attributes {dimension_semantics = [#tpu.dimension_semantics<parallel>], iteration_bounds = array<i64: 2>, scalar_prefetch = 0 : i64, scratch_operands = 0 : i64, tpu.core_type = #tpu.core_type<tc>, window_params = [{transform_indices = @transform_0, window_bounds = array<i64: 128, 256>}, {pipeline_mode = #tpu.pipeline_mode<synchronous>, transform_indices = @transform_1, window_bounds = array<i64: 1, 256>}, {pipeline_mode = #tpu.pipeline_mode<synchronous>, transform_indices = @transform_2, window_bounds = array<i64: 1, 256>}, {pipeline_mode = #tpu.pipeline_mode<synchronous>, transform_indices = @transform_3, window_bounds = array<i64: 256, 512>}, {pipeline_mode = #tpu.pipeline_mode<synchronous>, transform_indices = @transform_4, window_bounds = array<i64: 1, 512>}, {transform_indices = @transform_5, window_bounds = array<i64: 128, 512>}]} {
    %c0 = arith.constant 0 : index
    %c0_0 = arith.constant 0 : index
    %0 = vector.load %arg1[%c0, %c0_0] : memref<128x256xbf16, #tpu.memory_space<vmem>>, vector<128x256xbf16>
    %c0_1 = arith.constant 0 : index
    %c0_2 = arith.constant 0 : index
    %1 = vector.load %arg2[%c0_1, %c0_2] : memref<1x256xf32, #tpu.memory_space<vmem>>, vector<1x256xf32>
    %c0_3 = arith.constant 0 : index
    %c0_4 = arith.constant 0 : index
    %2 = vector.load %arg3[%c0_3, %c0_4] : memref<1x256xf32, #tpu.memory_space<vmem>>, vector<1x256xf32>
    %3 = arith.extf %0 : vector<128x256xbf16> to vector<128x256xf32>
    %cst = arith.constant dense<0.000000e+00> : vector<128xf32>
    %4 = vector.multi_reduction <add>, %3, %cst [1] : vector<128x256xf32> to vector<128xf32>
    %5 = vector.shape_cast %4 : vector<128xf32> to vector<128x1xf32>
    %cst_5 = arith.constant 2.560000e+02 : f32
    %6 = vector.broadcast %cst_5 : f32 to vector<128x1xf32>
    %7 = arith.divf %5, %6 : vector<128x1xf32>
    %8 = arith.mulf %3, %3 : vector<128x256xf32>
    %cst_6 = arith.constant dense<0.000000e+00> : vector<128xf32>
    %9 = vector.multi_reduction <add>, %8, %cst_6 [1] : vector<128x256xf32> to vector<128xf32>
    %10 = vector.shape_cast %9 : vector<128xf32> to vector<128x1xf32>
    %cst_7 = arith.constant 2.560000e+02 : f32
    %11 = vector.broadcast %cst_7 : f32 to vector<128x1xf32>
    %12 = arith.divf %10, %11 : vector<128x1xf32>
    %13 = arith.mulf %7, %7 : vector<128x1xf32>
    %14 = arith.subf %12, %13 : vector<128x1xf32>
    %cst_8 = arith.constant 0.000000e+00 : f32
    %15 = vector.broadcast %cst_8 : f32 to vector<128x1xf32>
    %16 = arith.maximumf %14, %15 : vector<128x1xf32>
    %17 = vector.broadcast %7 : vector<128x1xf32> to vector<128x256xf32>
    %18 = arith.subf %3, %17 : vector<128x256xf32>
    %cst_9 = arith.constant 9.99999974E-6 : f32
    %19 = vector.broadcast %cst_9 : f32 to vector<128x1xf32>
    %20 = arith.addf %16, %19 : vector<128x1xf32>
    %21 = math.rsqrt %20 : vector<128x1xf32>
    %22 = vector.broadcast %21 : vector<128x1xf32> to vector<128x256xf32>
    %23 = arith.mulf %18, %22 : vector<128x256xf32>
    %24 = vector.broadcast %1 : vector<1x256xf32> to vector<128x256xf32>
    %25 = arith.mulf %23, %24 : vector<128x256xf32>
    %26 = vector.broadcast %2 : vector<1x256xf32> to vector<128x256xf32>
    %27 = arith.addf %25, %26 : vector<128x256xf32>
    %28 = arith.truncf %27 : vector<128x256xf32> to vector<128x256xbf16>
    %c0_10 = arith.constant 0 : index
    %c0_11 = arith.constant 0 : index
    %29 = vector.load %arg4[%c0_10, %c0_11] : memref<256x512xbf16, #tpu.memory_space<vmem>>, vector<256x512xbf16>
    %cst_12 = arith.constant dense<0.000000e+00> : vector<128x512xf32>
    %30 = tpu.matmul %28, %29, %cst_12 {dimension_numbers = #tpu.dot_dimension_numbers<[1], [0], [0], [1], [0, 0, 1, 1], [], []>} : vector<128x256xbf16>, vector<256x512xbf16>, vector<128x512xf32> -> vector<128x512xf32>
    %c0_13 = arith.constant 0 : index
    %c0_14 = arith.constant 0 : index
    %31 = vector.load %arg5[%c0_13, %c0_14] : memref<1x512xf32, #tpu.memory_space<vmem>>, vector<1x512xf32>
    %32 = vector.broadcast %31 : vector<1x512xf32> to vector<128x512xf32>
    %33 = arith.addf %30, %32 : vector<128x512xf32>
    %34 = arith.truncf %33 : vector<128x512xf32> to vector<128x512xbf16>
    %c0_15 = arith.constant 0 : index
    %c0_16 = arith.constant 0 : index
    %35 = vector.load %arg6[%c0_15, %c0_16] : memref<128x512xbf16, #tpu.memory_space<vmem>>, vector<128x512xbf16>
    tpu.vector_store %arg6[%c0_15, %c0_16], %34 {strides = array<i32>} : memref<128x512xbf16, #tpu.memory_space<vmem>>, vector<128x512xbf16>,
    return
  }
  func.func @transform_0(%arg0: i32) -> (i32, i32) {
    %c0_i32 = arith.constant 0 : i32
    %c0_i32_0 = arith.constant 0 : i32
    return %arg0, %c0_i32 : i32, i32
  }
  func.func @transform_1(%arg0: i32) -> (i32, i32) {
    %c0_i32 = arith.constant 0 : i32
    %c0_i32_0 = arith.constant 0 : i32
    %c0_i32_1 = arith.constant 0 : i32
    return %c0_i32, %c0_i32_0 : i32, i32
  }
  func.func @transform_2(%arg0: i32) -> (i32, i32) {
    %c0_i32 = arith.constant 0 : i32
    %c0_i32_0 = arith.constant 0 : i32
    %c0_i32_1 = arith.constant 0 : i32
    return %c0_i32, %c0_i32_0 : i32, i32
  }
  func.func @transform_3(%arg0: i32) -> (i32, i32) {
    %c0_i32 = arith.constant 0 : i32
    %c0_i32_0 = arith.constant 0 : i32
    %c0_i32_1 = arith.constant 0 : i32
    return %c0_i32, %c0_i32_0 : i32, i32
  }
  func.func @transform_4(%arg0: i32) -> (i32, i32) {
    %c0_i32 = arith.constant 0 : i32
    %c0_i32_0 = arith.constant 0 : i32
    %c0_i32_1 = arith.constant 0 : i32
    return %c0_i32, %c0_i32_0 : i32, i32
  }
  func.func @transform_5(%arg0: i32) -> (i32, i32) {
    %c0_i32 = arith.constant 0 : i32
    %c0_i32_0 = arith.constant 0 : i32
    return %arg0, %c0_i32 : i32, i32
  }
}

</mosaic_0001>

<bundles_post_ra>
// kernel: tpu_custom_call.1
= control target key start
LH: loop header
LB: loop body
LE: loop exit
PB: predicated region body
PF: predicated region fallthrough
CT: control target
= control target key end

     0   :  { %s2989_s0 = inlined_call_operand.hbm [shape: bf16[256,256], index: 0, kind: input, shape index: {}]   ;;  %s2990_s1 = inlined_call_operand.vmem [shape: f32[1,256], index: 1, kind: input, shape index: {}]   ;;  %s2991_s2 = inlined_call_operand.hbm [shape: f32[1,256], index: 2, kind: input, shape index: {}]   ;;  %s2992_s3 = inlined_call_operand.hbm [shape: bf16[256,512], index: 3, kind: input, shape index: {}]   ;;  %s2993_s4 = inlined_call_operand.vmem [shape: f32[1,512], index: 4, kind: input, shape index: {}]   ;;  %s2994_s5 = inlined_call_operand.hbm [shape: bf16[256,512], index: 5, kind: output, shape index: {}]  }
   0x1   :  { %3000 = sst [smem:[#allocation13_spill]] %s2991_s2 }
   0x2   :  { %10 = vsyncpa [#allocation3], 0 }
   0x3   :  { %12 = vsyncpa [#allocation3 + $0x1], 0 }
   0x4   :  { %13 = vsyncpa [#allocation6], 0 }
   0x5   :  { %14 = vsyncpa [#allocation4], 0 }
   0x6   :  { %16 = vsyncpa [#allocation4 + $0x1], 0  ;;  %s2244_s18 = smov 0   ;;  %s2246_s19 = smov 0  }
   0x7   :  { %s2248_s20 = smov 0   ;;  %s2250_s21 = smov 0  }
   0x8 LB: > { %s2265_s22 = sadd.s32 4294967295, %s2202_s21   ;;  %s1693_s23 = sadd.s32 4294967294, %s2202_s21   ;;  %s2202_s21 = sphi %s2250_s21, %s3024_s21   ;;  %s2198_s20 = sphi %s2248_s20, %s3023_s20   ;;  %s2194_s19 = sphi %s2246_s19, %s3022_s19   ;;  %s2190_s18 = sphi %s2244_s18, %s3021_s18  }
   0x9   : > { %s2269_s24 = sadd.s32 1, %s2202_s21   ;;  %s29_s25 = sadd.s32 1, %s2198_s20 }
   0xa   : > { %s26_s26 = ssub.s32 %s2202_s21, %s2269_s24  ;;  %p36_p0 = scmp.ne.s32.totalorder %s2198_s20, %s2194_s19 }
   0xb   : > { %p27_p1 = scmp.eq.s32.totalorder %s26_s26, 0  ;;  %p37_p2 = scmp.eq.s32.totalorder %s2202_s21, 0 }
   0xc   : > { %p42_p3 = scmp.ne.s32.totalorder %s2194_s19, %s2190_s18  ;;  %p2995_p4 = scmp.eq.s32.totalorder %s2265_s22, 0 }
   0xd   : > { %s2281_s27 = scalar_select %p27_p1, %s2198_s20, %s29_s25  }
   0xe   : > { %p2283_p5 = por %p37_p2, %p36_p0  ;;  %p2289_p6 = por %p2995_p4, %p42_p3 }
   0xf   : > { %3001 = sst [smem:[#allocation12_spill]] %s2281_s27  ;;  %p150_p7 = scmp.eq.s32.totalorder %s2265_s22, 1 }
  0x10   : > { %s3003_s29 = scalar_select %p2289_p6, 1, 0 }
  0x11   : > { %p156_p8 = scmp.eq.s32.totalorder %s1693_s23, 1  ;;  %p1694_p9 = scmp.ge.s32.totalorder %s2202_s21, 1 }
  0x12   : > { %p163_p10 = scmp.lt.s32.totalorder %s2202_s21, 3  ;;  %p2296_p11 = por %p150_p7, %p36_p0 }
  0x13   : > { %p2300_p12 = por %p156_p8, %p42_p3  ;;  %s2204_s8 = smov [#allocation5]  }
  0x14   : > { %s3004_s30 = scalar_select %p2296_p11, 1, 0 }
  0x15   : > { %s3005_s6 = scalar_select %p2300_p12, 1, 0 }
  0x16   : > { %p2304_p13 = pnand %p1694_p9, %p163_p10  ;;  %s179_s9 = sshll.u32 %s2204_s8, 4  ;;  %s180_s9 = int_to_ptr.vmem [resolvable:$true] %s179_s9 }
  0x17   : > { %p1874_p4 = scmp.lt.s32.totalorder %s2202_s21, 2  ;;  %p3007_p0 = scmp.eq.s32.totalorder %s2265_s22, 0 }
  0x18   : > { %s3006_s7 = scalar_select %p2304_p13, 1, 0 }
  0x19   : > { %p1857_p2 = pneg %p2304_p13  ;;  %p2320_p3 = pnand %p1874_p4, %p2283_p5 }
  0x1a   : > { %s2205_s12 = smov [#allocation7]   ;;  %s3010_s2 = sld [smem:[#allocation13_spill]] }
  0x1b   : > { %p2314_p7 = pnand %p1857_p2, %p3007_p0  ;;  %s189_s13 = sshll.u32 %s2205_s12, 4  ;;  %s2324_s13 = int_to_ptr.vmem [resolvable:$true] %s189_s13 }
  0x1c   : > { %s3009_s11 = scalar_select %p2320_p3, 1, 0 }
  0x1d   : > { %p2048_p9 = pneg %p2314_p7 }
  0x20   : > { %s2046_s16 = scalar_lea.hbm %s3010_s2, 32 }
  0x21   : > { %p2047_p8 = scmp.ne.s32.totalorder %s3010_s2, %s2046_s16  ;;  %p2053_p10 = scmp.lt.u32.totalorder %s2046_s16, %s3010_s2 }
  0x23   : > { %p2049_p4 = pnand %p2048_p9, %p2047_p8 }
  0x25   : > { %p2050_p5 = pneg %p2049_p4 }
  0x27   : > { %p2055_p2 = pnand %p2053_p10, %p2050_p5 }
  0x29   : > { %2058 = shalt.err (!%p2055_p2)
}
  0x2a   : > { %s2059_s28 = scalar_lea.vmem %s180_s9, 32  ;;  %p2067_p11 = scmp.lt.s32.totalorder %s180_s9, %s180_s9 }
  0x2b   : > { %p2060_p0 = scmp.ne.s32.totalorder %s180_s9, %s2059_s28  ;;  %p2068_p6 = scmp.lt.s32.totalorder %s2059_s28, %s2059_s28 }
  0x2d   : > { %p2062_p1 = pnand %p2060_p0, %p2048_p9  ;;  %p2069_p13 = por %p2068_p6, %p2067_p11 }
  0x2f   : > { %p2063_p12 = pneg %p2062_p1 }
  0x31   : > { %p2070_p3 = pnand %p2069_p13, %p2063_p12 }
  0x33   : > { %2073 = shalt.err (!%p2070_p3)
}
  0x34   : > { %1860 = dma.hbm_to_vmem [thread:$0]  (!%p2314_p7), %s3010_s2, 32, %s180_s9, [#allocation6]  }
  0x35   : > { %s206_s14 = sand.u32 1, %s2198_s20   ;;  %s2074_s17 = scalar_lea.hbm %s2992_s3, 8192 }
  0x36   : > { %p2075_p1 = scmp.ne.s32.totalorder %s2992_s3, %s2074_s17  ;;  %p2081_p12 = scmp.lt.u32.totalorder %s2074_s17, %s2992_s3 }
  0x38   : > { %p2077_p6 = pnand %p2075_p1, %p2048_p9 }
  0x3a   : > { %p2078_p11 = pneg %p2077_p6 }
  0x3c   : > { %p2083_p13 = pnand %p2081_p12, %p2078_p11 }
  0x3e   : > { %2086 = shalt.err (!%p2083_p13)
}
  0x3f   : > { %s2087_s9 = scalar_lea.vmem %s2324_s13, 8192  ;;  %p2095_p5 = scmp.lt.s32.totalorder %s2324_s13, %s2324_s13 }
  0x40   : > { %p2088_p3 = scmp.ne.s32.totalorder %s2324_s13, %s2087_s9  ;;  %p2096_p10 = scmp.lt.s32.totalorder %s2087_s9, %s2087_s9 }
  0x42   : > { %p2090_p8 = pnand %p2088_p3, %p2048_p9  ;;  %p2097_p2 = por %p2096_p10, %p2095_p5 }
  0x44   : > { %p2091_p4 = pneg %p2090_p8 }
  0x46   : > { %p2098_p0 = pnand %p2097_p2, %p2091_p4 }
  0x48   : > { %2101 = shalt.err (!%p2098_p0)
}
  0x49   : > { %s2206_s8 = smov 256   ;;  %s2207_s12 = smov 16  }
  0x4a   : > { %1863 = dma.hbm_to_vmem [thread:$0]  (!%p2314_p7), %s2992_s3, 8192, %s2324_s13, [#allocation6], %s2206_s8, %s2206_s8, %s2207_s12  }
  0x4b   : > { %s1698_s17 = sshll.u32 %s206_s14, 7  ;;  %s1810_s23 = sshll.u32 %s2202_s21, 11 }
  0x4c   : > { %s2378_s28 = scalar_lea.hbm %s2989_s0, %s1810_s23  ;;  %s210_s9 = scalar_lea.vmem [#allocation2], %s1698_s17 }
  0x4d   : > { %s218_s2 = sshll.u32 %s210_s9, 4  ;;  %s2382_s10 = scalar_lea.sflag [#allocation3], %s206_s14  ;;  %s2380_s2 = int_to_ptr.vmem [resolvable:$true] %s218_s2 }
  0x4e   : > { %s2102_s27 = scalar_lea.hbm %s2378_s28, 2048  ;;  %p3011_p7 = scmp.ne.s32.totalorder %s3009_s11, 0 }
  0x4f   : > { %p2103_p9 = scmp.ne.s32.totalorder %s2378_s28, %s2102_s27  ;;  %s2107_s12 = scalar_lea.hbm %s2989_s0, 4096 }
  0x50   : > { %p2104_p1 = pneg %p3011_p7  ;;  %p2108_p12 = scmp.lt.u32.totalorder %s2378_s28, %s2989_s0 }
  0x51   : > { %p2109_p13 = scmp.lt.u32.totalorder %s2107_s12, %s2102_s27  ;;  %p2111_p8 = scmp.lt.u32.totalorder %s2102_s27, %s2378_s28 }
  0x52   : > { %p2105_p6 = pnand %p2104_p1, %p2103_p9 }
  0x53   : > { %p2110_p3 = por %p2109_p13, %p2108_p12 }
  0x54   : > { %p2106_p11 = pneg %p2105_p6 }
  0x55   : > { %p2112_p4 = por %p2111_p8, %p2110_p3 }
  0x57   : > { %p2113_p5 = pnand %p2112_p4, %p2106_p11 }
  0x59   : > { %2116 = shalt.err (!%p2113_p5)
}
  0x5a   : > { %s2117_s14 = scalar_lea.vmem %s2380_s2, 2048  ;;  %s2208_s17 = smov [#allocation2]  }
  0x5b   : > { %p2118_p10 = scmp.ne.s32.totalorder %s2380_s2, %s2117_s14  ;;  %s2122_s23 = sshll.u32 %s2208_s17, 4  ;;  %s2123_s23 = int_to_ptr.vmem [resolvable:$false] %s2122_s23 }
  0x5c   : > { %s2124_s25 = scalar_lea.vmem %s2123_s23, 4096  ;;  %p2125_p9 = scmp.lt.s32.totalorder %s2380_s2, %s2123_s23 }
  0x5d   : > { %p2120_p2 = pnand %p2118_p10, %p2104_p1  ;;  %p2126_p6 = scmp.lt.s32.totalorder %s2124_s25, %s2117_s14 }
  0x5f   : > { %p2121_p0 = pneg %p2120_p2  ;;  %p2127_p12 = por %p2126_p6, %p2125_p9 }
  0x61   : > { %p2128_p13 = pnand %p2127_p12, %p2121_p0 }
  0x63   : > { %2131 = shalt.err (!%p2128_p13)
}
  0x64   : > { %s2209_s27 = smov 128   ;;  %s2210_s26 = smov 8  }
  0x65   : > { %1867 = dma.hbm_to_vmem [thread:$0]  (!%p3011_p7), %s2378_s28, 2048, %s2380_s2, %s2382_s10, %s2209_s27, %s2209_s27, %s2210_s26  }
  0x66   : > { %p3012_p1 = scmp.ne.s32.totalorder %s3006_s7, 0 }
  0x67   : > { %s2413_s9 = sand.u32 (!%p3012_p1), 1, %s2194_s19   ;;  %p3013_p11 = scmp.ne.s32.totalorder (!%p3012_p1), %s3003_s29, 0 }
  0x68   : > { %230 = sbr.rel (%p3012_p1) target bundleno = 590 (0x24e), region = 40  ;;  %s1703_s13 = sshll.u32 (!%p3012_p1), %s2413_s9, 7 }
  0x69   : > { %s233_s8 = scalar_lea.sflag (!%p3012_p1), [#allocation3], %s2413_s9  ;;  %s2417_s12 = scalar_lea.vmem (!%p3012_p1), [#allocation2], %s1703_s13 }
  0x6f   : > { %2177 = dma.done.wait (%p3013_p11), %s233_s8, 2048  }
  0x70   : > { %2179 = vsyncadd (%p3013_p11), %s233_s8, 4294965248  ;;  %p3014_p7 = scmp.eq.s32.totalorder %s2265_s22, 0 }
  0x72   : > { %2181 = dma.done.wait (%p3014_p7), [#allocation6], 8224   ;;  %p3015_p3 = pmov %p3014_p7 }
  0x73   : > { %v273_v0 = vld [vmem:[%s2417_s12] sm:$0xff]  ;;  %v274_v1 = vld [vmem:[%s2417_s12 + $0x8] sm:$0xff]  ;;  %v275_v6 = vld [vmem:[%s2417_s12 + $0x10] sm:$0xff]  ;;  %s1706_s28 = sshll.u32 %s2413_s9, 8  ;;  %s1844_s15 = sshll.u32 %s2265_s22, 12 }
  0x74   : > { %2183 = vsyncadd (%p3015_p3), [#allocation6], 4294959072  ;;  %v2429_v2 = vunpack.c.l.bf16 %v273_v0  ;;  %v2431_v3 = vunpack.c.h.bf16 %v273_v0  ;;  %v2433_v4 = vunpack.c.l.bf16 %v274_v1  ;;  %v2435_v5 = vunpack.c.h.bf16 %v274_v1  ;;  %v276_v12 = vld [vmem:[%s2417_s12 + $0x18] sm:$0xff]  ;;  %v1922_v22 = vld [vmem:[#allocation7] ss:$16 sps:$4 sm:$0xff]   ;;  %s2848_s10 = scalar_lea.vmem [#allocation8], %s1706_s28  ;;  %s2939_s22 = scalar_lea.hbm %s2994_s5, %s1844_s15 }
  0x75   : > { %v2451_v15 = vunpack.c.l.bf16 %v275_v6  ;;  %v2453_v16 = vunpack.c.h.bf16 %v275_v6  ;;  %v1918_v17 = vld [vmem:[#allocation7 + $0x4] ss:$16 sps:$4 sm:$0xff]   ;;  %v2455_v19 = vunpack.c.l.bf16 %v276_v12  ;;  %v2457_v20 = vunpack.c.h.bf16 %v276_v12  ;;  %v1920_v21 = vld [vmem:[#allocation7 + $0xc] ss:$16 sps:$4 sm:$0xff]   ;;  %v1923_v23 = vld [vmem:[#allocation7 + $0x8] ss:$16 sps:$4 sm:$0xff]  }
  0x76   : > { %v323_v7 = vadd.f32 %v2431_v3, %v2429_v2  ;;  %v388_v8 = vmul.f32 %v2429_v2, %v2429_v2  ;;  %v389_v9 = vmul.f32 %v2431_v3, %v2431_v3  ;;  %v390_v10 = vmul.f32 %v2433_v4, %v2433_v4  ;;  %v277_v24 = vld [vmem:[%s2417_s12 + $0x20] sm:$0xff]  ;;  %1136 = vmatprep.subr.bf16.mxu0 %v1918_v17  ;;  %v1929_v31 = vld [vmem:[#allocation7 + $0x28] ss:$16 sps:$4 sm:$0xff]   ;;  %v279_v51 = vld [vmem:[%s2417_s12 + $0x30] sm:$0xff]  ;;  %s1601_s16 = sshll.u32 %s2848_s10, 4  ;;  %s1587_s23 = scalar_lea.sflag [#allocation4], %s2413_s9  ;;  %s2941_s16 = int_to_ptr.vmem [resolvable:$true] %s1601_s16 }
  0x77   : > { %v391_v11 = vmul.f32 %v2435_v5, %v2435_v5  ;;  %v326_v14 = vadd.f32 %v2435_v5, %v2433_v4  ;;  %v1924_v25 = vld [vmem:[#allocation7 + $0x24] ss:$16 sps:$4 sm:$0xff]   ;;  %v329_v26 = vadd.f32 %v2453_v16, %v2451_v15  ;;  %v392_v27 = vmul.f32 %v2451_v15, %v2451_v15  ;;  %1249 = vmatprep.subr.bf16.mxu1 %v1920_v21  ;;  %v1926_v29 = vld [vmem:[#allocation7 + $0x2c] ss:$16 sps:$4 sm:$0xff]   ;;  %v1928_v30 = vld [vmem:[#allocation7 + $0x20] ss:$16 sps:$4 sm:$0xff]  }
  0x78   : > { %324 = vadd.xlane.f32.xlu0 %v323_v7  ;;  %v420_v13 = vadd.f32 %v389_v9, %v388_v8  ;;  %v393_v28 = vmul.f32 %v2453_v16, %v2453_v16  ;;  %1137 = vmatpush1.bf16.msra.mxu0 %v1922_v22  ;;  %v332_v32 = vadd.f32 %v2457_v20, %v2455_v19  ;;  %v1930_v35 = vld [vmem:[#allocation7 + $0x44] ss:$16 sps:$4 sm:$0xff]   ;;  %v1932_v37 = vld [vmem:[#allocation7 + $0x4c] ss:$16 sps:$4 sm:$0xff]   ;;  %v2473_v39 = vunpack.c.l.bf16 %v277_v24  ;;  %v1934_v41 = vld [vmem:[#allocation7 + $0x40] ss:$16 sps:$4 sm:$0xff]  }
  0x79   : > { %v423_v18 = vadd.f32 %v391_v11, %v390_v10  ;;  %1250 = vmatpush1.bf16.msra.mxu1 %v1923_v23  ;;  %v394_v33 = vmul.f32 %v2455_v19, %v2455_v19  ;;  %v395_v34 = vmul.f32 %v2457_v20, %v2457_v20  ;;  %1138 = vmatprep.subr.bf16.mxu0 %v1924_v25  ;;  %v278_v36 = vld [vmem:[%s2417_s12 + $0x28] sm:$0xff]  ;;  %v2475_v40 = vunpack.c.h.bf16 %v277_v24  ;;  %v1940_v52 = vld [vmem:[#allocation7 + $0x60] ss:$16 sps:$4 sm:$0xff]   ;;  %v280_v58 = vld [vmem:[%s2417_s12 + $0x38] sm:$0xff]  ;;  %s2132_s25 = scalar_lea.vmem %s2941_s16, 4096  ;;  %p3017_p4 = scmp.ne.s32.totalorder %s3004_s30, 0 }
  0x7a   : > { %421 = vadd.xlane.f32.xlu1 %v420_v13  ;;  %1251 = vmatprep.subr.bf16.mxu1 %v1926_v29  ;;  %v426_v38 = vadd.f32 %v393_v28, %v392_v27  ;;  %v1935_v42 = vld [vmem:[#allocation7 + $0x48] ss:$16 sps:$4 sm:$0xff]   ;;  %v2477_v44 = vunpack.c.l.bf16 %v278_v36  ;;  %v2479_v45 = vunpack.c.h.bf16 %v278_v36  ;;  %v1936_v46 = vld [vmem:[#allocation7 + $0x64] ss:$16 sps:$4 sm:$0xff]   ;;  %v1938_v47 = vld [vmem:[#allocation7 + $0x6c] ss:$16 sps:$4 sm:$0xff]   ;;  %v396_v49 = vmul.f32 %v2473_v39, %v2473_v39  ;;  %p2133_p8 = scmp.ne.s32.totalorder %s2941_s16, %s2132_s25 }
  0x7b   : > { %v429_v43 = vadd.f32 %v395_v34, %v394_v33  ;;  %v335_v48 = vadd.f32 %v2475_v40, %v2473_v39  ;;  %v397_v50 = vmul.f32 %v2475_v40, %v2475_v40  ;;  %v1941_v53 = vld [vmem:[#allocation7 + $0x68] ss:$16 sps:$4 sm:$0xff]   ;;  %v1942_v57 = vld [vmem:[#allocation7 + $0x84] ss:$16 sps:$4 sm:$0xff]   ;;  %v1944_v59 = vld [vmem:[#allocation7 + $0x8c] ss:$16 sps:$4 sm:$0xff]   ;;  %v2495_v61 = vunpack.c.l.bf16 %v279_v51 }
  0x7c   : > { %327 = vadd.xlane.f32.xlu0 %v326_v14  ;;  %1139 = vmatpush1.bf16.msra.mxu0 %v1928_v30  ;;  %v338_v54 = vadd.f32 %v2479_v45, %v2477_v44  ;;  %v398_v55 = vmul.f32 %v2477_v44, %v2477_v44  ;;  %v399_v56 = vmul.f32 %v2479_v45, %v2479_v45  ;;  %v2497_v62 = vunpack.c.h.bf16 %v279_v51  ;;  %v1946_v63 = vld [vmem:[#allocation7 + $0x80] ss:$16 sps:$4 sm:$0xff]   ;;  %v1947_v0 = vld [vmem:[#allocation7 + $0x88] ss:$16 sps:$4 sm:$0xff]   ;;  %v1948_v8 = vld [vmem:[#allocation7 + $0xa4] ss:$16 sps:$4 sm:$0xff]   ;;  %p2134_p5 = pnand %p2133_p8, %p3017_p4 }
  0x7d   : > { %1252 = vmatpush1.bf16.msra.mxu1 %v1929_v31  ;;  %1140 = vmatprep.subr.bf16.mxu0 %v1930_v35  ;;  %v432_v60 = vadd.f32 %v397_v50, %v396_v49  ;;  %v2499_v6 = vunpack.c.l.bf16 %v280_v58  ;;  %v2501_v7 = vunpack.c.h.bf16 %v280_v58  ;;  %v1950_v9 = vld [vmem:[#allocation7 + $0xac] ss:$16 sps:$4 sm:$0xff]   ;;  %v400_v11 = vmul.f32 %v2495_v61, %v2495_v61  ;;  %v1952_v14 = vld [vmem:[#allocation7 + $0xa0] ss:$16 sps:$4 sm:$0xff]   ;;  %v1953_v17 = vld [vmem:[#allocation7 + $0xa8] ss:$16 sps:$4 sm:$0xff]  }
  0x7e   : > { %424 = vadd.xlane.f32.xlu1 %v423_v18  ;;  %1253 = vmatprep.subr.bf16.mxu1 %v1932_v37  ;;  %v435_v1 = vadd.f32 %v399_v56, %v398_v55  ;;  %v341_v10 = vadd.f32 %v2497_v62, %v2495_v61  ;;  %v401_v12 = vmul.f32 %v2497_v62, %v2497_v62  ;;  %v281_v13 = vld [vmem:[%s2417_s12 + $0x40] sm:$0xff]  ;;  %v282_v24 = vld [vmem:[%s2417_s12 + $0x48] sm:$0xff]  ;;  %v284_v50 = vld [vmem:[%s2417_s12 + $0x58] sm:$0xff]  ;;  %p2135_p10 = pneg %p2134_p5  ;;  %s2211_s27 = smov [#allocation8]  }
  0x7f   : > { %v344_v18 = vadd.f32 %v2501_v7, %v2499_v6  ;;  %v402_v21 = vmul.f32 %v2499_v6, %v2499_v6  ;;  %v403_v22 = vmul.f32 %v2501_v7, %v2501_v7  ;;  %v1954_v23 = vld [vmem:[#allocation7 + $0xc4] ss:$16 sps:$4 sm:$0xff]   ;;  %v1956_v25 = vld [vmem:[#allocation7 + $0xcc] ss:$16 sps:$4 sm:$0xff]   ;;  %v2517_v27 = vunpack.c.l.bf16 %v281_v13  ;;  %v1958_v29 = vld [vmem:[#allocation7 + $0xc0] ss:$16 sps:$4 sm:$0xff]  }
  0x80   : > { %330 = vadd.xlane.f32.xlu0 %v329_v26  ;;  %1141 = vmatpush1.bf16.msra.mxu0 %v1934_v41  ;;  %v438_v26 = vadd.f32 %v401_v12, %v400_v11  ;;  %v2519_v28 = vunpack.c.h.bf16 %v281_v13  ;;  %v1959_v30 = vld [vmem:[#allocation7 + $0xc8] ss:$16 sps:$4 sm:$0xff]   ;;  %v2523_v33 = vunpack.c.h.bf16 %v282_v24  ;;  %v1960_v34 = vld [vmem:[#allocation7 + $0xe4] ss:$16 sps:$4 sm:$0xff]   ;;  %v1962_v35 = vld [vmem:[#allocation7 + $0xec] ss:$16 sps:$4 sm:$0xff]   ;;  %v2543_v58 = vunpack.c.l.bf16 %v284_v50 }
  0x81   : > { %1254 = vmatpush1.bf16.msra.mxu1 %v1935_v42  ;;  %1142 = vmatprep.subr.bf16.mxu0 %v1936_v46  ;;  %v441_v31 = vadd.f32 %v403_v22, %v402_v21  ;;  %v404_v37 = vmul.f32 %v2517_v27, %v2517_v27  ;;  %v283_v41 = vld [vmem:[%s2417_s12 + $0x50] sm:$0xff]  ;;  %v1971_v56 = vld [vmem:[#allocation7 + $0x108] ss:$16 sps:$4 sm:$0xff]   ;;  %s2136_s26 = sshll.u32 %s2211_s27, 4  ;;  %s2137_s26 = int_to_ptr.vmem [resolvable:$false] %s2136_s26 }
  0x82   : > { %333 = vadd.xlane.f32.xlu1 %v332_v32  ;;  %1255 = vmatprep.subr.bf16.mxu1 %v1938_v47  ;;  %v2521_v32 = vunpack.c.l.bf16 %v282_v24  ;;  %v347_v36 = vadd.f32 %v2519_v28, %v2517_v27  ;;  %v1964_v42 = vld [vmem:[#allocation7 + $0xe0] ss:$16 sps:$4 sm:$0xff]   ;;  %v1966_v49 = vld [vmem:[#allocation7 + $0x104] ss:$16 sps:$4 sm:$0xff]   ;;  %v1968_v51 = vld [vmem:[#allocation7 + $0x10c] ss:$16 sps:$4 sm:$0xff]   ;;  %p2139_p2 = scmp.lt.s32.totalorder %s2941_s16, %s2137_s26 }
  0x83   : > { %v1970_v55 = vld [vmem:[#allocation7 + $0x100] ss:$16 sps:$4 sm:$0xff]   ;;  %v1977_v11 = vld [vmem:[#allocation7 + $0x128] ss:$16 sps:$4 sm:$0xff]   ;;  %v1978_v12 = vld [vmem:[#allocation7 + $0x144] ss:$16 sps:$4 sm:$0xff]  }
  0x84   : > { %427 = vadd.xlane.f32.xlu0 %v426_v38  ;;  %1143 = vmatpush1.bf16.msra.mxu0 %v1940_v52  ;;  %v405_v38 = vmul.f32 %v2519_v28, %v2519_v28  ;;  %v350_v46 = vadd.f32 %v2523_v33, %v2521_v32  ;;  %v406_v47 = vmul.f32 %v2521_v32, %v2521_v32  ;;  %v1980_v21 = vld [vmem:[#allocation7 + $0x14c] ss:$16 sps:$4 sm:$0xff]   ;;  %s2138_s13 = scalar_lea.vmem %s2137_s26, 8192 }
  0x85   : > { %1256 = vmatpush1.bf16.msra.mxu1 %v1941_v53  ;;  %1144 = vmatprep.subr.bf16.mxu0 %v1942_v57  ;;  %v2539_v53 = vunpack.c.l.bf16 %v283_v41  ;;  %p2140_p0 = scmp.lt.s32.totalorder %s2138_s13, %s2132_s25 }
  0x86   : > { %430 = vadd.xlane.f32.xlu1 %v429_v43  ;;  %1257 = vmatprep.subr.bf16.mxu1 %v1944_v59  ;;  %v1965_v43 = vld [vmem:[#allocation7 + $0xe8] ss:$16 sps:$4 sm:$0xff]   ;;  %v444_v52 = vadd.f32 %v405_v38, %v404_v37  ;;  %v2545_v59 = vunpack.c.h.bf16 %v284_v50 }
  0x87   : > { %v288_v50 = vld [vmem:[%s2417_s12 + $0x78] sm:$0xff]  ;;  %p2141_p9 = por %p2140_p0, %p2139_p2 }
  0x88   : > { %336 = vadd.xlane.f32.xlu0 %v335_v48  ;;  %1145 = vmatpush1.bf16.msra.mxu0 %v1946_v63  ;;  %v407_v48 = vmul.f32 %v2523_v33, %v2523_v33  ;;  %v285_v63 = vld [vmem:[%s2417_s12 + $0x60] sm:$0xff]  ;;  %v356_v13 = vadd.f32 %v2545_v59, %v2543_v58 }
  0x89   : > { %1258 = vmatpush1.bf16.msra.mxu1 %v1947_v0  ;;  %1146 = vmatprep.subr.bf16.mxu0 %v1948_v8  ;;  %v1974_v0 = vld [vmem:[#allocation7 + $0x12c] ss:$16 sps:$4 sm:$0xff]   ;;  %v408_v8 = vmul.f32 %v2539_v53, %v2539_v53  ;;  %v2563_v24 = vunpack.c.h.bf16 %v285_v63  ;;  %p2142_p6 = pnand %p2141_p9, %p2135_p10 }
  0x8a   : > { %339 = vadd.xlane.f32.xlu1 %v338_v54  ;;  %1259 = vmatprep.subr.bf16.mxu1 %v1950_v9  ;;  %v2541_v54 = vunpack.c.h.bf16 %v283_v41  ;;  %v447_v57 = vadd.f32 %v407_v48, %v406_v47  ;;  %v287_v41 = vld [vmem:[%s2417_s12 + $0x70] sm:$0xff] }
  0x8b   : > { %v413_v38 = vmul.f32 %v2563_v24, %v2563_v24 }
  0x8c   : > { %433 = vadd.xlane.f32.xlu0 %v432_v60  ;;  %1147 = vmatpush1.bf16.msra.mxu0 %v1952_v14  ;;  %v1972_v60 = vld [vmem:[#allocation7 + $0x124] ss:$16 sps:$4 sm:$0xff]   ;;  %v409_v9 = vmul.f32 %v2541_v54, %v2541_v54  ;;  %v410_v14 = vmul.f32 %v2543_v58, %v2543_v58 }
  0x8d   : > { %1260 = vmatpush1.bf16.msra.mxu1 %v1953_v17  ;;  %1148 = vmatprep.subr.bf16.mxu0 %v1954_v23  ;;  %v411_v17 = vmul.f32 %v2545_v59, %v2545_v59  ;;  %v2561_v23 = vunpack.c.l.bf16 %v285_v63 }
  0x8e   : > { %436 = vadd.xlane.f32.xlu1 %v435_v1  ;;  %1261 = vmatprep.subr.bf16.mxu1 %v1956_v25  ;;  %v353_v1 = vadd.f32 %v2541_v54, %v2539_v53  ;;  %v450_v22 = vadd.f32 %v409_v9, %v408_v8  ;;  %v1982_v25 = vld [vmem:[#allocation7 + $0x140] ss:$16 sps:$4 sm:$0xff]   ;;  %v1996_v8 = vld [vmem:[#allocation7 + $0x1a4] ss:$16 sps:$4 sm:$0xff]   ;;  %v1998_v9 = vld [vmem:[#allocation7 + $0x1ac] ss:$16 sps:$4 sm:$0xff]  }
  0x8f   : > { %v412_v37 = vmul.f32 %v2561_v23, %v2561_v23 }
  0x90   : > { %342 = vadd.xlane.f32.xlu0 %v341_v10  ;;  %1149 = vmatpush1.bf16.msra.mxu0 %v1958_v29  ;;  %v1976_v10 = vld [vmem:[#allocation7 + $0x120] ss:$16 sps:$4 sm:$0xff]   ;;  %v453_v29 = vadd.f32 %v411_v17, %v410_v14  ;;  %v2001_v14 = vld [vmem:[#allocation7 + $0x1a8] ss:$16 sps:$4 sm:$0xff]  }
  0x91   : > { %1262 = vmatpush1.bf16.msra.mxu1 %v1959_v30  ;;  %1150 = vmatprep.subr.bf16.mxu0 %v1960_v34  ;;  %v1984_v34 = vld [vmem:[#allocation7 + $0x164] ss:$16 sps:$4 sm:$0xff]  }
  0x92   : > { %345 = vadd.xlane.f32.xlu1 %v344_v18  ;;  %1263 = vmatprep.subr.bf16.mxu1 %v1962_v35  ;;  %v286_v18 = vld [vmem:[%s2417_s12 + $0x68] sm:$0xff] }
  0x93   : > { %v2565_v30 = vunpack.c.l.bf16 %v286_v18  ;;  %v1986_v35 = vld [vmem:[#allocation7 + $0x16c] ss:$16 sps:$4 sm:$0xff]  }
  0x94   : > { %439 = vadd.xlane.f32.xlu0 %v438_v26  ;;  %1151 = vmatpush1.bf16.msra.mxu0 %v1964_v42  ;;  %v1983_v26 = vld [vmem:[#allocation7 + $0x148] ss:$16 sps:$4 sm:$0xff]   ;;  %v1988_v42 = vld [vmem:[#allocation7 + $0x160] ss:$16 sps:$4 sm:$0xff]  }
  0x95   : > { %1264 = vmatpush1.bf16.msra.mxu1 %v1965_v43  ;;  %1152 = vmatprep.subr.bf16.mxu0 %v1966_v49  ;;  %v1989_v43 = vld [vmem:[#allocation7 + $0x168] ss:$16 sps:$4 sm:$0xff]   ;;  %v414_v47 = vmul.f32 %v2565_v30, %v2565_v30  ;;  %v1990_v49 = vld [vmem:[#allocation7 + $0x184] ss:$16 sps:$4 sm:$0xff]  }
  0x96   : > { %442 = vadd.xlane.f32.xlu1 %v441_v31  ;;  %1265 = vmatprep.subr.bf16.mxu1 %v1968_v51  ;;  %v2567_v31 = vunpack.c.h.bf16 %v286_v18  ;;  %v1992_v51 = vld [vmem:[#allocation7 + $0x18c] ss:$16 sps:$4 sm:$0xff]  }
  0x98   : > { %348 = vadd.xlane.f32.xlu0 %v347_v36  ;;  %1153 = vmatpush1.bf16.msra.mxu0 %v1970_v55  ;;  %v359_v36 = vadd.f32 %v2563_v24, %v2561_v23  ;;  %v415_v48 = vmul.f32 %v2567_v31, %v2567_v31  ;;  %v2583_v55 = vunpack.c.l.bf16 %v287_v41 }
  0x99   : > { %1266 = vmatpush1.bf16.msra.mxu1 %v1971_v56  ;;  %1154 = vmatprep.subr.bf16.mxu0 %v1972_v60  ;;  %v2585_v56 = vunpack.c.h.bf16 %v287_v41  ;;  %v1995_v60 = vld [vmem:[#allocation7 + $0x188] ss:$16 sps:$4 sm:$0xff]  }
  0x9a   : > { %351 = vadd.xlane.f32.xlu1 %v350_v46  ;;  %1267 = vmatprep.subr.bf16.mxu1 %v1974_v0  ;;  %v362_v46 = vadd.f32 %v2567_v31, %v2565_v30  ;;  %v459_v63 = vadd.f32 %v415_v48, %v414_v47  ;;  %v2587_v0 = vunpack.c.l.bf16 %v288_v50  ;;  %v2013_v41 = vld [vmem:[#allocation7 + $0x1e8] ss:$16 sps:$4 sm:$0xff]  }
  0x9c   : > { %445 = vadd.xlane.f32.xlu0 %v444_v52  ;;  %1155 = vmatpush1.bf16.msra.mxu0 %v1976_v10  ;;  %v456_v52 = vadd.f32 %v413_v38, %v412_v37  ;;  %v365_v10 = vadd.f32 %v2585_v56, %v2583_v55  ;;  %v418_v18 = vmul.f32 %v2587_v0, %v2587_v0  ;;  %v2010_v37 = vld [vmem:[#allocation7 + $0x1ec] ss:$16 sps:$4 sm:$0xff]   ;;  %v2012_v38 = vld [vmem:[#allocation7 + $0x1e0] ss:$16 sps:$4 sm:$0xff]  }
  0x9d   : > { %1268 = vmatpush1.bf16.msra.mxu1 %v1977_v11  ;;  %1156 = vmatprep.subr.bf16.mxu0 %v1978_v12  ;;  %v416_v11 = vmul.f32 %v2583_v55, %v2583_v55  ;;  %v417_v12 = vmul.f32 %v2585_v56, %v2585_v56 }
  0x9e   : > { %448 = vadd.xlane.f32.xlu1 %v447_v57  ;;  %1269 = vmatprep.subr.bf16.mxu1 %v1980_v21  ;;  %v1994_v57 = vld [vmem:[#allocation7 + $0x180] ss:$16 sps:$4 sm:$0xff]  }
  0xa0   : > { %354 = vadd.xlane.f32.xlu0 %v353_v1  ;;  %1157 = vmatpush1.bf16.msra.mxu0 %v1982_v25  ;;  %v2589_v1 = vunpack.c.h.bf16 %v288_v50  ;;  %v2004_v25 = vld [vmem:[#allocation7 + $0x1cc] ss:$16 sps:$4 sm:$0xff]  }
  0xa1   : > { %1270 = vmatpush1.bf16.msra.mxu1 %v1983_v26  ;;  %1158 = vmatprep.subr.bf16.mxu0 %v1984_v34  ;;  %v462_v26 = vadd.f32 %v417_v12, %v416_v11  ;;  %v2007_v34 = vld [vmem:[#allocation7 + $0x1c8] ss:$16 sps:$4 sm:$0xff]  }
  0xa2   : > { %357 = vadd.xlane.f32.xlu1 %v356_v13  ;;  %1271 = vmatprep.subr.bf16.mxu1 %v1986_v35  ;;  %v2000_v13 = vld [vmem:[#allocation7 + $0x1a0] ss:$16 sps:$4 sm:$0xff]   ;;  %v368_v17 = vadd.f32 %v2589_v1, %v2587_v0  ;;  %v419_v21 = vmul.f32 %v2589_v1, %v2589_v1 }
  0xa4   : > { %451 = vadd.xlane.f32.xlu0 %v450_v22  ;;  %1159 = vmatpush1.bf16.msra.mxu0 %v1988_v42  ;;  %v2002_v22 = vld [vmem:[#allocation7 + $0x1c4] ss:$16 sps:$4 sm:$0xff]   ;;  %v465_v35 = vadd.f32 %v419_v21, %v418_v18 }
  0xa5   : > { %1272 = vmatpush1.bf16.msra.mxu1 %v1989_v43  ;;  %1160 = vmatprep.subr.bf16.mxu0 %v1990_v49 }
  0xa6   : > { %454 = vadd.xlane.f32.xlu1 %v453_v29  ;;  %1273 = vmatprep.subr.bf16.mxu1 %v1992_v51  ;;  %v2006_v29 = vld [vmem:[#allocation7 + $0x1c0] ss:$16 sps:$4 sm:$0xff]  }
  0xa8   : > { %360 = vadd.xlane.f32.xlu0 %v359_v36  ;;  %1161 = vmatpush1.bf16.msra.mxu0 %v1994_v57  ;;  %v2008_v36 = vld [vmem:[#allocation7 + $0x1e4] ss:$16 sps:$4 sm:$0xff]  }
  0xa9   : > { %1274 = vmatpush1.bf16.msra.mxu1 %v1995_v60  ;;  %1162 = vmatprep.subr.bf16.mxu0 %v1996_v8 }
  0xaa   : > { %363 = vadd.xlane.f32.xlu1 %v362_v46  ;;  %1275 = vmatprep.subr.bf16.mxu1 %v1998_v9 }
  0xac   : > { %457 = vadd.xlane.f32.xlu0 %v456_v52  ;;  %1163 = vmatpush1.bf16.msra.mxu0 %v2000_v13  ;;  %v629_v13 = vlaneseq }
  0xad   : > { %1276 = vmatpush1.bf16.msra.mxu1 %v2001_v14  ;;  %1164 = vmatprep.subr.bf16.mxu0 %v2002_v22 }
  0xae   : > { %460 = vadd.xlane.f32.xlu1 %v459_v63  ;;  %1277 = vmatprep.subr.bf16.mxu1 %v2004_v25 }
  0xb0   : > { %366 = vadd.xlane.f32.xlu0 %v365_v10  ;;  %1165 = vmatpush1.bf16.msra.mxu0 %v2006_v29  ;;  %v2617_v29 = vshrl.u32 %v629_v13, 7  ;;  %v290_v13 = vld [vmem:[#allocation5] sm:$0x3] }
  0xb1   : > { %1278 = vmatpush1.bf16.msra.mxu1 %v2007_v34  ;;  %1166 = vmatprep.subr.bf16.mxu0 %v2008_v36 }
  0xb2   : > { %369 = vadd.xlane.f32.xlu1 %v368_v17  ;;  %1279 = vmatprep.subr.bf16.mxu1 %v2010_v37 }
  0xb4   : > { %463 = vadd.xlane.f32.xlu0 %v462_v26  ;;  %1167 = vmatpush1.bf16.msra.mxu0 %v2012_v38 }
  0xb5   : > { %1280 = vmatpush1.bf16.msra.mxu1 %v2013_v41 }
  0xb6   : > { %466 = vadd.xlane.f32.xlu1 %v465_v35 }
 0x105   : > { %v325_v42 = vpop.xlane.xlu0 %324 }
 0x106   : > { %v2603_v43 = vmul.f32 0.00390625, %v325_v42 }
 0x107   : > { %v422_v46 = vpop.xlane.xlu1 %421 }
 0x108   : > { %v468_v47 = vmul.f32 0.00390625, %v422_v46  ;;  %v484_v48 = vmul.f32 %v2603_v43, %v2603_v43 }
 0x109   : > { %v328_v49 = vpop.xlane.xlu0 %327 }
 0x10a   : > { %v500_v50 = vsub.f32 %v468_v47, %v484_v48  ;;  %v2607_v51 = vmul.f32 0.00390625, %v328_v49  ;;  %v2624_v47 = vsub.s32 1, %v2617_v29 }
 0x10b   : > { %v425_v52 = vpop.xlane.xlu1 %424 }
 0x10c   : > { %v516_v57 = vmax.f32 %v500_v50, 0.0  ;;  %v469_v60 = vmul.f32 0.00390625, %v425_v52  ;;  %v485_v63 = vmul.f32 %v2607_v51, %v2607_v51  ;;  %v289_v50 = vld [vmem:[%s2990_s1] sm:$0x3] }
 0x10d   : > { %v331_v8 = vpop.xlane.xlu0 %330 }
 0x10e   : > { %v564_v9 = vadd.f32 1e-05, %v516_v57  ;;  %v2611_v10 = vmul.f32 0.00390625, %v331_v8  ;;  %v501_v11 = vsub.f32 %v469_v60, %v485_v63  ;;  %v2634_v63 = vsub.s32 0, %v2617_v29 }
 0x10f   : > { %v334_v12 = vpop.xlane.xlu1 %333 }
 0x110   : > { %2014 = vrsqrt.f32 %v564_v9  ;;  %v2613_v14 = vmul.f32 0.00390625, %v334_v12  ;;  %v517_v17 = vmax.f32 %v501_v11, 0.0  ;;  %v486_v18 = vmul.f32 %v2611_v10, %v2611_v10 }
 0x111   : > { %v428_v21 = vpop.xlane.xlu0 %427  ;;  %v533_v9 = vsub.f32 %v2431_v3, %v2603_v43  ;;  %v2646_v3 = vrot.slane %v289_v50, %v2634_v63 }
 0x112   : > { %v470_v22 = vmul.f32 0.00390625, %v428_v21  ;;  %v565_v25 = vadd.f32 1e-05, %v517_v17  ;;  %v487_v35 = vmul.f32 %v2613_v14, %v2613_v14  ;;  %v2641_v21 = vrot.slane %v289_v50, %v2624_v47 }
 0x113   : > { %v431_v26 = vpop.xlane.xlu1 %430  ;;  %v537_v50 = vsub.f32 %v2453_v16, %v2611_v10  ;;  %v539_v16 = vsub.f32 %v2457_v20, %v2613_v14 }
 0x114   : > { %v502_v34 = vsub.f32 %v470_v22, %v486_v18  ;;  %v471_v36 = vmul.f32 0.00390625, %v431_v26  ;;  %2016 = vrsqrt.f32 %v565_v25 }
 0x115   : > { %v337_v37 = vpop.xlane.xlu0 %336 }
 0x116   : > { %v518_v38 = vmax.f32 %v502_v34, 0.0  ;;  %v503_v41 = vsub.f32 %v471_v36, %v487_v35  ;;  %v2621_v42 = vmul.f32 0.00390625, %v337_v37  ;;  %v532_v34 = vsub.f32 %v2429_v2, %v2603_v43 }
 0x117   : > { %v340_v46 = vpop.xlane.xlu1 %339  ;;  %v2649_v36 = vrot.slane %v290_v13, %v2634_v63  ;;  %v2652_v37 = vrot.slane %v290_v13, %v2624_v47  ;;  %v535_v2 = vsub.f32 %v2435_v5, %v2607_v51  ;;  %v536_v43 = vsub.f32 %v2451_v15, %v2611_v10 }
 0x118   : > { %v566_v48 = vadd.f32 1e-05, %v518_v38  ;;  %v519_v49 = vmax.f32 %v503_v41, 0.0  ;;  %v2629_v52 = vmul.f32 0.00390625, %v340_v46  ;;  %v488_v57 = vmul.f32 %v2621_v42, %v2621_v42 }
 0x119   : > { %v434_v60 = vpop.xlane.xlu0 %433  ;;  %v534_v38 = vsub.f32 %v2433_v4, %v2607_v51 }
 0x11a   : > { %v2015_v8 = vpop.eup %2014  ;;  %2018 = vrsqrt.f32 %v566_v48  ;;  %v567_v11 = vadd.f32 1e-05, %v519_v49  ;;  %v472_v12 = vmul.f32 0.00390625, %v434_v60  ;;  %v489_v17 = vmul.f32 %v2629_v52, %v2629_v52 }
 0x11b   : > { %v437_v18 = vpop.xlane.xlu1 %436  ;;  %v597_v26 = vmul.f32 %v2015_v8, %v533_v9  ;;  %v596_v60 = vmul.f32 %v2015_v8, %v532_v34  ;;  %v538_v9 = vsub.f32 %v2455_v19, %v2613_v14  ;;  %v541_v14 = vsub.f32 %v2475_v40, %v2621_v42 }
 0x11c   : > { %2020 = vrsqrt.f32 %v567_v11  ;;  %v504_v22 = vsub.f32 %v472_v12, %v488_v57  ;;  %v473_v25 = vmul.f32 0.00390625, %v437_v18 }
 0x11d   : > { %v343_v35 = vpop.xlane.xlu0 %342  ;;  %v640_v12 = vmul.f32 %v2641_v21, %v597_v26  ;;  %v639_v26 = vmul.f32 %v2646_v3, %v596_v60 }
 0x11e   : > { %v520_v41 = vmax.f32 %v504_v22, 0.0  ;;  %v505_v46 = vsub.f32 %v473_v25, %v489_v17  ;;  %v2656_v48 = vmul.f32 0.00390625, %v343_v35  ;;  %v2017_v49 = vpop.eup %2016 }
 0x11f   : > { %v346_v57 = vpop.xlane.xlu1 %345  ;;  %v599_v17 = vmul.f32 %v2017_v49, %v535_v2  ;;  %v598_v15 = vmul.f32 %v2017_v49, %v534_v38 }
 0x120   : > { %v568_v4 = vadd.f32 1e-05, %v520_v41  ;;  %v521_v11 = vmax.f32 %v505_v46, 0.0  ;;  %v2667_v13 = vmul.f32 0.00390625, %v346_v57  ;;  %v490_v5 = vmul.f32 %v2656_v48, %v2656_v48 }
 0x121   : > { %v440_v51 = vpop.xlane.xlu0 %439  ;;  %v642_v25 = vmul.f32 %v2641_v21, %v599_v17  ;;  %v641_v20 = vmul.f32 %v2646_v3, %v598_v15  ;;  %v683_v46 = vadd.f32 %v2652_v37, %v640_v12  ;;  %v682_v15 = vadd.f32 %v2649_v36, %v639_v26 }
 0x122   : > { %2022 = vrsqrt.f32 %v568_v4  ;;  %v569_v10 = vadd.f32 1e-05, %v521_v11  ;;  %v474_v8 = vmul.f32 0.00390625, %v440_v51  ;;  %v491_v18 = vmul.f32 %v2667_v13, %v2667_v13 }
 0x123   : > { %v443_v22 = vpop.xlane.xlu1 %442  ;;  %v685_v49 = vadd.f32 %v2652_v37, %v642_v25  ;;  %v684_v60 = vadd.f32 %v2649_v36, %v641_v20 }
 0x124   : > { %v2019_v34 = vpop.eup %2018  ;;  %2024 = vrsqrt.f32 %v569_v10  ;;  %v506_v35 = vsub.f32 %v474_v8, %v490_v5  ;;  %v475_v38 = vmul.f32 0.00390625, %v443_v22 }
 0x125   : > { %v349_v41 = vpop.xlane.xlu0 %348  ;;  %v601_v2 = vmul.f32 %v2019_v34, %v537_v50  ;;  %v715_v17 = vpack.c.bf16 %v685_v49, %v683_v46  ;;  %v600_v12 = vmul.f32 %v2019_v34, %v536_v43  ;;  %v714_v50 = vpack.c.bf16 %v684_v60, %v682_v15 }
 0x126   : > { %v2021_v57 = vpop.eup %2020  ;;  %v522_v4 = vmax.f32 %v506_v35, 0.0  ;;  %v507_v11 = vsub.f32 %v475_v38, %v491_v18  ;;  %v2684_v51 = vmul.f32 0.00390625, %v349_v41  ;;  %v543_v43 = vsub.f32 %v2479_v45, %v2629_v52 }
 0x127   : > { %v352_v5 = vpop.xlane.xlu1 %351  ;;  %v603_v10 = vmul.f32 %v2021_v57, %v539_v16  ;;  %v644_v40 = vmul.f32 %v2641_v21, %v601_v2  ;;  %v602_v19 = vmul.f32 %v2021_v57, %v538_v9  ;;  %1168 = vmatprep.mubr.bf16.mxu0 %v715_v17  ;;  %1281 = vmatprep.mubr.bf16.mxu1 %v715_v17 }
 0x128   : > { %v570_v8 = vadd.f32 1e-05, %v522_v4  ;;  %v523_v22 = vmax.f32 %v507_v11, 0.0  ;;  %v2689_v25 = vmul.f32 0.00390625, %v352_v5  ;;  %v492_v18 = vmul.f32 %v2684_v51, %v2684_v51  ;;  %1169 = vmatmul.mubr.bf16.vlgmr.msra.gmra.mrb[0].mxu0 %v714_v50  ;;  %1282 = vmatmul.mubr.bf16.vlgmr.msra.gmra.mrb[0].mxu1 %v714_v50 }
 0x129   : > { %v446_v35 = vpop.xlane.xlu0 %445  ;;  %v646_v38 = vmul.f32 %v2641_v21, %v603_v10  ;;  %v542_v16 = vsub.f32 %v2477_v44, %v2629_v52  ;;  %v687_v41 = vadd.f32 %v2652_v37, %v644_v40  ;;  %v544_v57 = vsub.f32 %v2495_v61, %v2656_v48 }
 0x12a   : > { %2026 = vrsqrt.f32 %v570_v8  ;;  %v571_v26 = vadd.f32 1e-05, %v523_v22  ;;  %v476_v20 = vmul.f32 0.00390625, %v446_v35  ;;  %v493_v9 = vmul.f32 %v2689_v25, %v2689_v25 }
 0x12b   : > { %v449_v34 = vpop.xlane.xlu1 %448  ;;  %v689_v44 = vadd.f32 %v2652_v37, %v646_v38  ;;  %v643_v45 = vmul.f32 %v2646_v3, %v600_v12  ;;  %v645_v52 = vmul.f32 %v2646_v3, %v602_v19  ;;  %v545_v12 = vsub.f32 %v2497_v62, %v2656_v48 }
 0x12c   : > { %v2023_v46 = vpop.eup %2022  ;;  %2028 = vrsqrt.f32 %v571_v26  ;;  %v508_v49 = vsub.f32 %v476_v20, %v492_v18  ;;  %v477_v2 = vmul.f32 0.00390625, %v449_v34  ;;  %v546_v62 = vsub.f32 %v2499_v6, %v2667_v13 }
 0x12d   : > { %v355_v4 = vpop.xlane.xlu0 %354  ;;  %v605_v11 = vmul.f32 %v2023_v46, %v541_v14  ;;  %v717_v10 = vpack.c.bf16 %v689_v44, %v687_v41  ;;  %v686_v8 = vadd.f32 %v2649_v36, %v643_v45  ;;  %v688_v22 = vadd.f32 %v2649_v36, %v645_v52 }
 0x12e   : > { %v2025_v60 = vpop.eup %2024  ;;  %v524_v5 = vmax.f32 %v508_v49, 0.0  ;;  %v509_v17 = vsub.f32 %v477_v2, %v493_v9  ;;  %v2706_v15 = vmul.f32 0.00390625, %v355_v4  ;;  %v3016_v14 = vsub.f32 %v2473_v39, %v2621_v42 }
 0x12f   : > { %v358_v40 = vpop.xlane.xlu1 %357  ;;  %v607_v50 = vmul.f32 %v2025_v60, %v543_v43  ;;  %v648_v61 = vmul.f32 %v2641_v21, %v605_v11  ;;  %1178 = vmatprep.mubr.bf16.mxu0 %v717_v10  ;;  %1291 = vmatprep.mubr.bf16.mxu1 %v717_v10  ;;  %v716_v26 = vpack.c.bf16 %v688_v22, %v686_v8 }
 0x130   : > { %v572_v18 = vadd.f32 1e-05, %v524_v5  ;;  %v525_v19 = vmax.f32 %v509_v17, 0.0  ;;  %v604_v35 = vmul.f32 %v2023_v46, %v3016_v14  ;;  %v2716_v38 = vmul.f32 0.00390625, %v358_v40 }
 0x131   : > { %v494_v20 = vmul.f32 %v2706_v15, %v2706_v15  ;;  %v452_v43 = vpop.xlane.xlu0 %451  ;;  %v650_v9 = vmul.f32 %v2641_v21, %v607_v50  ;;  %v547_v41 = vsub.f32 %v2501_v7, %v2667_v13  ;;  %1179 = vmatmul.mubr.bf16.gmra.mrb[4].mxu0 %v716_v26  ;;  %1292 = vmatmul.mubr.bf16.gmra.mrb[4].mxu1 %v716_v26 }
 0x132   : > { %2030 = vrsqrt.f32 %v572_v18  ;;  %v573_v48 = vadd.f32 1e-05, %v525_v19  ;;  %v478_v34 = vmul.f32 0.00390625, %v452_v43  ;;  %v495_v39 = vmul.f32 %v2716_v38, %v2716_v38 }
 0x133   : > { %v455_v42 = vpop.xlane.xlu1 %454  ;;  %v691_v46 = vadd.f32 %v2652_v37, %v648_v61  ;;  %v693_v6 = vadd.f32 %v2652_v37, %v650_v9  ;;  %v548_v4 = vsub.f32 %v2517_v27, %v2684_v51  ;;  %v606_v52 = vmul.f32 %v2025_v60, %v542_v16 }
 0x134   : > { %v2027_v49 = vpop.eup %2026  ;;  %2032 = vrsqrt.f32 %v573_v48  ;;  %v510_v2 = vsub.f32 %v478_v34, %v494_v20  ;;  %v479_v44 = vmul.f32 0.00390625, %v455_v42  ;;  %v647_v7 = vmul.f32 %v2646_v3, %v604_v35 }
 0x135   : > { %v361_v45 = vpop.xlane.xlu0 %360  ;;  %v609_v13 = vmul.f32 %v2027_v49, %v545_v12  ;;  %v719_v40 = vpack.c.bf16 %v693_v6, %v691_v46  ;;  %v549_v8 = vsub.f32 %v2519_v28, %v2684_v51  ;;  %v649_v50 = vmul.f32 %v2646_v3, %v606_v52 }
 0x136   : > { %v2029_v11 = vpop.eup %2028  ;;  %v526_v5 = vmax.f32 %v510_v2, 0.0  ;;  %v511_v17 = vsub.f32 %v479_v44, %v495_v39  ;;  %v2732_v10 = vmul.f32 0.00390625, %v361_v45  ;;  %v690_v60 = vadd.f32 %v2649_v36, %v647_v7 }
 0x137   : > { %v364_v22 = vpop.xlane.xlu1 %363  ;;  %v611_v61 = vmul.f32 %v2029_v11, %v547_v41  ;;  %v652_v18 = vmul.f32 %v2641_v21, %v609_v13  ;;  %1188 = vmatprep.mubr.bf16.mxu0 %v719_v40  ;;  %1301 = vmatprep.mubr.bf16.mxu1 %v719_v40  ;;  %v608_v12 = vmul.f32 %v2027_v49, %v544_v57 }
 0x138   : > { %v574_v19 = vadd.f32 1e-05, %v526_v5  ;;  %v527_v16 = vmax.f32 %v511_v17, 0.0  ;;  %v2739_v14 = vmul.f32 0.00390625, %v364_v22  ;;  %v692_v35 = vadd.f32 %v2649_v36, %v649_v50 }
 0x139   : > { %v496_v28 = vmul.f32 %v2732_v10, %v2732_v10  ;;  %v458_v26 = vpop.xlane.xlu0 %457  ;;  %v654_v20 = vmul.f32 %v2641_v21, %v611_v61  ;;  %v550_v43 = vsub.f32 %v2521_v32, %v2689_v25  ;;  %v551_v34 = vsub.f32 %v2523_v33, %v2689_v25 }
 0x13a   : > { %2034 = vrsqrt.f32 %v574_v19  ;;  %v575_v9 = vadd.f32 1e-05, %v527_v16  ;;  %v480_v48 = vmul.f32 0.00390625, %v458_v26  ;;  %v718_v57 = vpack.c.bf16 %v692_v35, %v690_v60 }
 0x13b   : > { %v497_v41 = vmul.f32 %v2739_v14, %v2739_v14  ;;  %v461_v39 = vpop.xlane.xlu1 %460  ;;  %v695_v42 = vadd.f32 %v2652_v37, %v652_v18  ;;  %v697_v44 = vadd.f32 %v2652_v37, %v654_v20  ;;  %v610_v6 = vmul.f32 %v2029_v11, %v546_v62 }
 0x13c   : > { %v2031_v46 = vpop.eup %2030  ;;  %2036 = vrsqrt.f32 %v575_v9  ;;  %v512_v49 = vsub.f32 %v480_v48, %v496_v28  ;;  %v481_v2 = vmul.f32 0.00390625, %v461_v39  ;;  %1189 = vmatmul.mubr.bf16.gmra.mrb[8].mxu0 %v718_v57  ;;  %1302 = vmatmul.mubr.bf16.gmra.mrb[8].mxu1 %v718_v57  ;;  %v651_v45 = vmul.f32 %v2646_v3, %v608_v12 }
 0x13d   : > { %v367_v32 = vpop.xlane.xlu0 %366  ;;  %v613_v33 = vmul.f32 %v2031_v46, %v549_v8  ;;  %v721_v5 = vpack.c.bf16 %v697_v44, %v695_v42  ;;  %v552_v17 = vsub.f32 %v2539_v53, %v2706_v15  ;;  %v653_v22 = vmul.f32 %v2646_v3, %v610_v6 }
 0x13e   : > { %v2033_v25 = vpop.eup %2032  ;;  %v528_v52 = vmax.f32 %v512_v49, 0.0  ;;  %v513_v7 = vsub.f32 %v481_v2, %v497_v41  ;;  %v2754_v13 = vmul.f32 0.00390625, %v367_v32  ;;  %v553_v62 = vsub.f32 %v2541_v54, %v2706_v15 }
 0x13f   : > { %v370_v40 = vpop.xlane.xlu1 %369  ;;  %v615_v50 = vmul.f32 %v2033_v25, %v551_v34  ;;  %v656_v61 = vmul.f32 %v2641_v21, %v613_v33  ;;  %1198 = vmatprep.mubr.bf16.mxu0 %v721_v5  ;;  %1311 = vmatprep.mubr.bf16.mxu1 %v721_v5  ;;  %v694_v18 = vadd.f32 %v2649_v36, %v651_v45 }
 0x140   : > { %v576_v11 = vadd.f32 1e-05, %v528_v52  ;;  %v529_v8 = vmax.f32 %v513_v7, 0.0  ;;  %v2763_v19 = vmul.f32 0.00390625, %v370_v40  ;;  %v696_v16 = vadd.f32 %v2649_v36, %v653_v22 }
 0x141   : > { %v498_v53 = vmul.f32 %v2754_v13, %v2754_v13  ;;  %v464_v60 = vpop.xlane.xlu0 %463  ;;  %v658_v12 = vmul.f32 %v2641_v21, %v615_v50  ;;  %v554_v35 = vsub.f32 %v2543_v58, %v2716_v38  ;;  %v555_v28 = vsub.f32 %v2545_v59, %v2716_v38 }
 0x142   : > { %2038 = vrsqrt.f32 %v576_v11  ;;  %v577_v54 = vadd.f32 1e-05, %v529_v8  ;;  %v482_v15 = vmul.f32 0.00390625, %v464_v60  ;;  %v720_v26 = vpack.c.bf16 %v696_v16, %v694_v18 }
 0x143   : > { %v499_v20 = vmul.f32 %v2763_v19, %v2763_v19  ;;  %v467_v9 = vpop.xlane.xlu1 %466  ;;  %v699_v48 = vadd.f32 %v2652_v37, %v656_v61  ;;  %v701_v39 = vadd.f32 %v2652_v37, %v658_v12  ;;  %v612_v58 = vmul.f32 %v2031_v46, %v548_v4 }
 0x144   : > { %v2035_v34 = vpop.eup %2034  ;;  %2040 = vrsqrt.f32 %v577_v54  ;;  %v514_v57 = vsub.f32 %v482_v15, %v498_v53  ;;  %v483_v41 = vmul.f32 0.00390625, %v467_v9  ;;  %1199 = vmatmul.mubr.bf16.gmra.mrb[12].mxu0 %v720_v26  ;;  %1312 = vmatmul.mubr.bf16.gmra.mrb[12].mxu1 %v720_v26  ;;  %v614_v59 = vmul.f32 %v2033_v25, %v550_v43 }
 0x145   : > { %v617_v38 = vmul.f32 %v2035_v34, %v553_v62  ;;  %v723_v44 = vpack.c.bf16 %v701_v39, %v699_v48  ;;  %v616_v32 = vmul.f32 %v2035_v34, %v552_v17  ;;  %v655_v6 = vmul.f32 %v2646_v3, %v612_v58 }
 0x146   : > { %v2037_v42 = vpop.eup %2036  ;;  %v530_v49 = vmax.f32 %v514_v57, 0.0  ;;  %v515_v2 = vsub.f32 %v483_v41, %v499_v20  ;;  %v657_v45 = vmul.f32 %v2646_v3, %v614_v59  ;;  %v557_v40 = vsub.f32 %v2563_v24, %v2732_v10 }
 0x147   : > { %v619_v33 = vmul.f32 %v2037_v42, %v555_v28  ;;  %v660_v52 = vmul.f32 %v2641_v21, %v617_v38  ;;  %1208 = vmatprep.mubr.bf16.mxu0 %v723_v44  ;;  %1321 = vmatprep.mubr.bf16.mxu1 %v723_v44  ;;  %v618_v27 = vmul.f32 %v2037_v42, %v554_v35 }
 0x148   : > { %v578_v7 = vadd.f32 1e-05, %v530_v49  ;;  %v531_v5 = vmax.f32 %v515_v2, 0.0  ;;  %v698_v51 = vadd.f32 %v2649_v36, %v655_v6  ;;  %v700_v4 = vadd.f32 %v2649_v36, %v657_v45 }
 0x149   : > { %v662_v43 = vmul.f32 %v2641_v21, %v619_v33  ;;  %v659_v25 = vmul.f32 %v2646_v3, %v616_v32  ;;  %v661_v17 = vmul.f32 %v2646_v3, %v618_v27  ;;  %v703_v50 = vadd.f32 %v2652_v37, %v660_v52 }
 0x14a   : > { %2042 = vrsqrt.f32 %v578_v7  ;;  %v579_v46 = vadd.f32 1e-05, %v531_v5  ;;  %v722_v22 = vpack.c.bf16 %v700_v4, %v698_v51  ;;  %v556_v11 = vsub.f32 %v2561_v23, %v2732_v10 }
 0x14b   : > { %v705_v61 = vadd.f32 %v2652_v37, %v662_v43  ;;  %v558_v8 = vsub.f32 %v2565_v30, %v2739_v14  ;;  %v559_v18 = vsub.f32 %v2567_v31, %v2739_v14  ;;  %v704_v24 = vadd.f32 %v2649_v36, %v661_v17 }
 0x14c   : > { %v2039_v62 = vpop.eup %2038  ;;  %2044 = vrsqrt.f32 %v579_v46  ;;  %1209 = vmatmul.mubr.bf16.gmra.mrb[16].mxu0 %v722_v22  ;;  %1322 = vmatmul.mubr.bf16.gmra.mrb[16].mxu1 %v722_v22  ;;  %v702_v12 = vadd.f32 %v2649_v36, %v659_v25  ;;  %v561_v28 = vsub.f32 %v2585_v56, %v2754_v13  ;;  %v560_v48 = vsub.f32 %v2583_v55, %v2754_v13 }
 0x14d   : > { %v725_v16 = vpack.c.bf16 %v705_v61, %v703_v50  ;;  %v621_v53 = vmul.f32 %v2039_v62, %v557_v40  ;;  %v620_v35 = vmul.f32 %v2039_v62, %v556_v11  ;;  %v562_v34 = vsub.f32 %v2587_v0, %v2763_v19 }
 0x14e   : > { %v2041_v60 = vpop.eup %2040  ;;  %v724_v54 = vpack.c.bf16 %v704_v24, %v702_v12  ;;  %v563_v57 = vsub.f32 %v2589_v1, %v2763_v19 }
 0x14f   : > { %1218 = vmatprep.mubr.bf16.mxu0 %v725_v16  ;;  %1331 = vmatprep.mubr.bf16.mxu1 %v725_v16  ;;  %v623_v23 = vmul.f32 %v2041_v60, %v559_v18  ;;  %v664_v10 = vmul.f32 %v2641_v21, %v621_v53  ;;  %v622_v30 = vmul.f32 %v2041_v60, %v558_v8 }
 0x150   : > { %v663_v15 = vmul.f32 %v2646_v3, %v620_v35 }
 0x151   : > { %v666_v31 = vmul.f32 %v2641_v21, %v623_v23  ;;  %v665_v14 = vmul.f32 %v2646_v3, %v622_v30  ;;  %v707_v26 = vadd.f32 %v2652_v37, %v664_v10 }
 0x152   : > { %v706_v59 = vadd.f32 %v2649_v36, %v663_v15 }
 0x153   : > { %v709_v20 = vadd.f32 %v2652_v37, %v666_v31  ;;  %v708_v39 = vadd.f32 %v2649_v36, %v665_v14 }
 0x154   : > { %v2043_v9 = vpop.eup %2042  ;;  %1219 = vmatmul.mubr.bf16.gmra.mrb[20].mxu0 %v724_v54  ;;  %1332 = vmatmul.mubr.bf16.gmra.mrb[20].mxu1 %v724_v54 }
 0x155   : > { %v727_v41 = vpack.c.bf16 %v709_v20, %v707_v26  ;;  %v625_v56 = vmul.f32 %v2043_v9, %v561_v28  ;;  %v624_v38 = vmul.f32 %v2043_v9, %v560_v48  ;;  %v726_v0 = vpack.c.bf16 %v708_v39, %v706_v59 }
 0x156   : > { %v2045_v58 = vpop.eup %2044 }
 0x157   : > { %1228 = vmatprep.mubr.bf16.mxu0 %v727_v41  ;;  %1341 = vmatprep.mubr.bf16.mxu1 %v727_v41  ;;  %v627_v42 = vmul.f32 %v2045_v58, %v563_v57  ;;  %v668_v55 = vmul.f32 %v2641_v21, %v625_v56  ;;  %v626_v13 = vmul.f32 %v2045_v58, %v562_v34 }
 0x158   : > { %v667_v44 = vmul.f32 %v2646_v3, %v624_v38 }
 0x159   : > { %v670_v49 = vmul.f32 %v2641_v21, %v627_v42  ;;  %v669_v1 = vmul.f32 %v2646_v3, %v626_v13  ;;  %v711_v19 = vadd.f32 %v2652_v37, %v668_v55  ;;  %v806_v21 = vsub.s32 2, %v2617_v29 }
 0x15a   : > { %v710_v45 = vadd.f32 %v2649_v36, %v667_v44  ;;  %v810_v3 = vsub.s32 3, %v2617_v29 }
 0x15b   : > { %v713_v2 = vadd.f32 %v2652_v37, %v670_v49  ;;  %v712_v6 = vadd.f32 %v2649_v36, %v669_v1  ;;  %v794_v37 = vld [vmem:[%s2993_s4] sm:$0xf] }
 0x15c   : > { %1229 = vmatmul.mubr.bf16.gmra.mrb[24].mxu0 %v726_v0  ;;  %1342 = vmatmul.mubr.bf16.gmra.mrb[24].mxu1 %v726_v0  ;;  %v2830_v52 = vrot.slane %v794_v37, %v2634_v63  ;;  %v2832_v7 = vrot.slane %v794_v37, %v806_v21  ;;  %v2835_v5 = vrot.slane %v794_v37, %v2624_v47 }
 0x15d   : > { %v729_v32 = vpack.c.bf16 %v713_v2, %v711_v19  ;;  %v728_v33 = vpack.c.bf16 %v712_v6, %v710_v45  ;;  %v2837_v36 = vrot.slane %v794_v37, %v810_v3 }
 0x15f   : > { %1238 = vmatprep.mubr.bf16.mxu0 %v729_v32  ;;  %1351 = vmatprep.mubr.bf16.mxu1 %v729_v32 }
 0x164   : > { %1239 = vmatmul.mubr.bf16.gmra.mrb[28].mxu0 %v728_v33  ;;  %1352 = vmatmul.mubr.bf16.gmra.mrb[28].mxu1 %v728_v33 }
 0x1fb   : > { %v1170_v27 = vpop.f32.mrb[0].mxu0  ;;  %v1283_v51 = vpop.f32.mrb[0].mxu1 }
 0x1fc   : > { %v1171_v4 = vadd.f32 %v1170_v27, %v2830_v52  ;;  %v1284_v43 = vadd.f32 %v1283_v51, %v2832_v7  ;;  %v1172_v46 = vpop.f32.mrb[1].mxu0  ;;  %v1285_v25 = vpop.f32.mrb[1].mxu1 }
 0x1fd   : > { %v1173_v29 = vadd.f32 %v1172_v46, %v2835_v5  ;;  %v1286_v63 = vadd.f32 %v1285_v25, %v2837_v36  ;;  %v1174_v17 = vpop.f32.mrb[2].mxu0  ;;  %v1287_v40 = vpop.f32.mrb[2].mxu1 }
 0x1fe   : > { %v1175_v47 = vadd.f32 %v1174_v17, %v2830_v52  ;;  %v1288_v22 = vadd.f32 %v1287_v40, %v2832_v7  ;;  %v1176_v50 = vpop.f32.mrb[3].mxu0  ;;  %v1289_v61 = vpop.f32.mrb[3].mxu1 }
 0x1ff   : > { %v1811_v62 = vpack.c.bf16 %v1173_v29, %v1171_v4  ;;  %v1812_v11 = vpack.c.bf16 %v1286_v63, %v1284_v43  ;;  %v1177_v8 = vadd.f32 %v1176_v50, %v2835_v5  ;;  %v1290_v18 = vadd.f32 %v1289_v61, %v2837_v36 }
 0x201   : > { %1554 = vst [vmem:[%s2848_s10] sm:$0xff] %v1811_v62  ;;  %1555 = vst [vmem:[%s2848_s10 + $0x8] sm:$0xff] %v1812_v11  ;;  %v1813_v16 = vpack.c.bf16 %v1177_v8, %v1175_v47  ;;  %v1814_v24 = vpack.c.bf16 %v1290_v18, %v1288_v22 }
 0x203   : > { %1556 = vst [vmem:[%s2848_s10 + $0x10] sm:$0xff] %v1813_v16  ;;  %1557 = vst [vmem:[%s2848_s10 + $0x18] sm:$0xff] %v1814_v24 }
 0x204   : > { %v1180_v53 = vpop.f32.mrb[4].mxu0  ;;  %v1293_v60 = vpop.f32.mrb[4].mxu1 }
 0x205   : > { %v1181_v12 = vadd.f32 %v1180_v53, %v2830_v52  ;;  %v1294_v35 = vadd.f32 %v1293_v60, %v2832_v7  ;;  %v1182_v23 = vpop.f32.mrb[5].mxu0  ;;  %v1295_v10 = vpop.f32.mrb[5].mxu1 }
 0x206   : > { %v1183_v30 = vadd.f32 %v1182_v23, %v2835_v5  ;;  %v1296_v54 = vadd.f32 %v1295_v10, %v2837_v36  ;;  %v1184_v31 = vpop.f32.mrb[6].mxu0  ;;  %v1297_v14 = vpop.f32.mrb[6].mxu1 }
 0x207   : > { %v1185_v15 = vadd.f32 %v1184_v31, %v2830_v52  ;;  %v1298_v28 = vadd.f32 %v1297_v14, %v2832_v7  ;;  %v1186_v26 = vpop.f32.mrb[7].mxu0  ;;  %v1299_v20 = vpop.f32.mrb[7].mxu1 }
 0x208   : > { %v1815_v9 = vpack.c.bf16 %v1183_v30, %v1181_v12  ;;  %v1816_v48 = vpack.c.bf16 %v1296_v54, %v1294_v35  ;;  %v1187_v34 = vadd.f32 %v1186_v26, %v2835_v5  ;;  %v1300_v57 = vadd.f32 %v1299_v20, %v2837_v36 }
 0x20a   : > { %1558 = vst [vmem:[%s2848_s10 + $0x20] sm:$0xff] %v1815_v9  ;;  %1559 = vst [vmem:[%s2848_s10 + $0x28] sm:$0xff] %v1816_v48  ;;  %v1817_v41 = vpack.c.bf16 %v1187_v34, %v1185_v15  ;;  %v1818_v39 = vpack.c.bf16 %v1300_v57, %v1298_v28 }
 0x20c   : > { %1560 = vst [vmem:[%s2848_s10 + $0x30] sm:$0xff] %v1817_v41  ;;  %1561 = vst [vmem:[%s2848_s10 + $0x38] sm:$0xff] %v1818_v39 }
 0x20f   : > { %v1190_v56 = vpop.f32.mrb[8].mxu0  ;;  %v1303_v58 = vpop.f32.mrb[8].mxu1 }
 0x210   : > { %v1191_v59 = vadd.f32 %v1190_v56, %v2830_v52  ;;  %v1304_v38 = vadd.f32 %v1303_v58, %v2832_v7  ;;  %v1192_v42 = vpop.f32.mrb[9].mxu0  ;;  %v1305_v55 = vpop.f32.mrb[9].mxu1 }
 0x211   : > { %v1193_v13 = vadd.f32 %v1192_v42, %v2835_v5  ;;  %v1306_v0 = vadd.f32 %v1305_v55, %v2837_v36  ;;  %v1194_v49 = vpop.f32.mrb[10].mxu0  ;;  %v1307_v1 = vpop.f32.mrb[10].mxu1 }
 0x212   : > { %v1195_v19 = vadd.f32 %v1194_v49, %v2830_v52  ;;  %v1308_v2 = vadd.f32 %v1307_v1, %v2832_v7  ;;  %v1196_v44 = vpop.f32.mrb[11].mxu0  ;;  %v1309_v32 = vpop.f32.mrb[11].mxu1 }
 0x213   : > { %v1819_v6 = vpack.c.bf16 %v1193_v13, %v1191_v59  ;;  %v1820_v45 = vpack.c.bf16 %v1306_v0, %v1304_v38  ;;  %v1197_v33 = vadd.f32 %v1196_v44, %v2835_v5  ;;  %v1310_v21 = vadd.f32 %v1309_v32, %v2837_v36 }
 0x215   : > { %1562 = vst [vmem:[%s2848_s10 + $0x40] sm:$0xff] %v1819_v6  ;;  %1563 = vst [vmem:[%s2848_s10 + $0x48] sm:$0xff] %v1820_v45  ;;  %v1821_v37 = vpack.c.bf16 %v1197_v33, %v1195_v19  ;;  %v1822_v3 = vpack.c.bf16 %v1310_v21, %v1308_v2 }
 0x217   : > { %1564 = vst [vmem:[%s2848_s10 + $0x50] sm:$0xff] %v1821_v37  ;;  %1565 = vst [vmem:[%s2848_s10 + $0x58] sm:$0xff] %v1822_v3  ;;  %v1200_v27 = vpop.f32.mrb[12].mxu0  ;;  %v1313_v51 = vpop.f32.mrb[12].mxu1 }
 0x218   : > { %v1201_v4 = vadd.f32 %v1200_v27, %v2830_v52  ;;  %v1314_v43 = vadd.f32 %v1313_v51, %v2832_v7  ;;  %v1202_v46 = vpop.f32.mrb[13].mxu0  ;;  %v1315_v25 = vpop.f32.mrb[13].mxu1 }
 0x219   : > { %v1203_v29 = vadd.f32 %v1202_v46, %v2835_v5  ;;  %v1316_v63 = vadd.f32 %v1315_v25, %v2837_v36  ;;  %v1204_v17 = vpop.f32.mrb[14].mxu0  ;;  %v1317_v40 = vpop.f32.mrb[14].mxu1 }
 0x21a   : > { %v1205_v47 = vadd.f32 %v1204_v17, %v2830_v52  ;;  %v1318_v22 = vadd.f32 %v1317_v40, %v2832_v7  ;;  %v1206_v50 = vpop.f32.mrb[15].mxu0  ;;  %v1319_v61 = vpop.f32.mrb[15].mxu1 }
 0x21b   : > { %v1823_v62 = vpack.c.bf16 %v1203_v29, %v1201_v4  ;;  %v1824_v11 = vpack.c.bf16 %v1316_v63, %v1314_v43  ;;  %v1207_v8 = vadd.f32 %v1206_v50, %v2835_v5  ;;  %v1320_v18 = vadd.f32 %v1319_v61, %v2837_v36 }
 0x21d   : > { %1566 = vst [vmem:[%s2848_s10 + $0x60] sm:$0xff] %v1823_v62  ;;  %1567 = vst [vmem:[%s2848_s10 + $0x68] sm:$0xff] %v1824_v11  ;;  %v1825_v16 = vpack.c.bf16 %v1207_v8, %v1205_v47  ;;  %v1826_v24 = vpack.c.bf16 %v1320_v18, %v1318_v22 }
 0x21f   : > { %1568 = vst [vmem:[%s2848_s10 + $0x70] sm:$0xff] %v1825_v16  ;;  %1569 = vst [vmem:[%s2848_s10 + $0x78] sm:$0xff] %v1826_v24  ;;  %v1210_v53 = vpop.f32.mrb[16].mxu0  ;;  %v1323_v60 = vpop.f32.mrb[16].mxu1 }
 0x220   : > { %v1211_v12 = vadd.f32 %v1210_v53, %v2830_v52  ;;  %v1324_v35 = vadd.f32 %v1323_v60, %v2832_v7  ;;  %v1212_v23 = vpop.f32.mrb[17].mxu0  ;;  %v1325_v10 = vpop.f32.mrb[17].mxu1 }
 0x221   : > { %v1213_v30 = vadd.f32 %v1212_v23, %v2835_v5  ;;  %v1326_v54 = vadd.f32 %v1325_v10, %v2837_v36  ;;  %v1214_v31 = vpop.f32.mrb[18].mxu0  ;;  %v1327_v14 = vpop.f32.mrb[18].mxu1 }
 0x222   : > { %v1215_v15 = vadd.f32 %v1214_v31, %v2830_v52  ;;  %v1328_v28 = vadd.f32 %v1327_v14, %v2832_v7  ;;  %v1216_v26 = vpop.f32.mrb[19].mxu0  ;;  %v1329_v20 = vpop.f32.mrb[19].mxu1 }
 0x223   : > { %v1827_v9 = vpack.c.bf16 %v1213_v30, %v1211_v12  ;;  %v1828_v48 = vpack.c.bf16 %v1326_v54, %v1324_v35  ;;  %v1217_v34 = vadd.f32 %v1216_v26, %v2835_v5  ;;  %v1330_v57 = vadd.f32 %v1329_v20, %v2837_v36 }
 0x225   : > { %1570 = vst [vmem:[%s2848_s10 + $0x80] sm:$0xff] %v1827_v9  ;;  %1571 = vst [vmem:[%s2848_s10 + $0x88] sm:$0xff] %v1828_v48  ;;  %v1829_v41 = vpack.c.bf16 %v1217_v34, %v1215_v15  ;;  %v1830_v39 = vpack.c.bf16 %v1330_v57, %v1328_v28 }
 0x227   : > { %1572 = vst [vmem:[%s2848_s10 + $0x90] sm:$0xff] %v1829_v41  ;;  %1573 = vst [vmem:[%s2848_s10 + $0x98] sm:$0xff] %v1830_v39  ;;  %v1220_v56 = vpop.f32.mrb[20].mxu0  ;;  %v1333_v58 = vpop.f32.mrb[20].mxu1 }
 0x228   : > { %v1221_v59 = vadd.f32 %v1220_v56, %v2830_v52  ;;  %v1334_v38 = vadd.f32 %v1333_v58, %v2832_v7  ;;  %v1222_v42 = vpop.f32.mrb[21].mxu0  ;;  %v1335_v55 = vpop.f32.mrb[21].mxu1 }
 0x229   : > { %v1223_v13 = vadd.f32 %v1222_v42, %v2835_v5  ;;  %v1336_v0 = vadd.f32 %v1335_v55, %v2837_v36  ;;  %v1224_v49 = vpop.f32.mrb[22].mxu0  ;;  %v1337_v1 = vpop.f32.mrb[22].mxu1 }
 0x22a   : > { %v1225_v19 = vadd.f32 %v1224_v49, %v2830_v52  ;;  %v1338_v2 = vadd.f32 %v1337_v1, %v2832_v7  ;;  %v1226_v44 = vpop.f32.mrb[23].mxu0  ;;  %v1339_v32 = vpop.f32.mrb[23].mxu1 }
 0x22b   : > { %v1831_v6 = vpack.c.bf16 %v1223_v13, %v1221_v59  ;;  %v1832_v45 = vpack.c.bf16 %v1336_v0, %v1334_v38  ;;  %v1227_v33 = vadd.f32 %v1226_v44, %v2835_v5  ;;  %v1340_v21 = vadd.f32 %v1339_v32, %v2837_v36 }
 0x22d   : > { %1574 = vst [vmem:[%s2848_s10 + $0xa0] sm:$0xff] %v1831_v6  ;;  %1575 = vst [vmem:[%s2848_s10 + $0xa8] sm:$0xff] %v1832_v45  ;;  %v1833_v37 = vpack.c.bf16 %v1227_v33, %v1225_v19  ;;  %v1834_v3 = vpack.c.bf16 %v1340_v21, %v1338_v2 }
 0x22f   : > { %1576 = vst [vmem:[%s2848_s10 + $0xb0] sm:$0xff] %v1833_v37  ;;  %1577 = vst [vmem:[%s2848_s10 + $0xb8] sm:$0xff] %v1834_v3  ;;  %v1230_v27 = vpop.f32.mrb[24].mxu0  ;;  %v1343_v51 = vpop.f32.mrb[24].mxu1 }
 0x230   : > { %v1231_v4 = vadd.f32 %v1230_v27, %v2830_v52  ;;  %v1344_v43 = vadd.f32 %v1343_v51, %v2832_v7  ;;  %v1232_v46 = vpop.f32.mrb[25].mxu0  ;;  %v1345_v25 = vpop.f32.mrb[25].mxu1 }
 0x231   : > { %v1233_v29 = vadd.f32 %v1232_v46, %v2835_v5  ;;  %v1346_v63 = vadd.f32 %v1345_v25, %v2837_v36  ;;  %v1234_v17 = vpop.f32.mrb[26].mxu0  ;;  %v1347_v40 = vpop.f32.mrb[26].mxu1 }
 0x232   : > { %v1235_v47 = vadd.f32 %v1234_v17, %v2830_v52  ;;  %v1348_v22 = vadd.f32 %v1347_v40, %v2832_v7  ;;  %v1236_v50 = vpop.f32.mrb[27].mxu0  ;;  %v1349_v61 = vpop.f32.mrb[27].mxu1 }
 0x233   : > { %v1835_v62 = vpack.c.bf16 %v1233_v29, %v1231_v4  ;;  %v1836_v11 = vpack.c.bf16 %v1346_v63, %v1344_v43  ;;  %v1237_v8 = vadd.f32 %v1236_v50, %v2835_v5  ;;  %v1350_v18 = vadd.f32 %v1349_v61, %v2837_v36 }
 0x235   : > { %1578 = vst [vmem:[%s2848_s10 + $0xc0] sm:$0xff] %v1835_v62  ;;  %1579 = vst [vmem:[%s2848_s10 + $0xc8] sm:$0xff] %v1836_v11  ;;  %v1837_v16 = vpack.c.bf16 %v1237_v8, %v1235_v47  ;;  %v1838_v24 = vpack.c.bf16 %v1350_v18, %v1348_v22 }
 0x237   : > { %1580 = vst [vmem:[%s2848_s10 + $0xd0] sm:$0xff] %v1837_v16  ;;  %1581 = vst [vmem:[%s2848_s10 + $0xd8] sm:$0xff] %v1838_v24  ;;  %v1240_v53 = vpop.f32.mrb[28].mxu0  ;;  %v1353_v60 = vpop.f32.mrb[28].mxu1 }
 0x238   : > { %v1241_v12 = vadd.f32 %v1240_v53, %v2830_v52  ;;  %v1354_v35 = vadd.f32 %v1353_v60, %v2832_v7  ;;  %v1242_v23 = vpop.f32.mrb[29].mxu0  ;;  %v1355_v10 = vpop.f32.mrb[29].mxu1 }
 0x239   : > { %v1243_v30 = vadd.f32 %v1242_v23, %v2835_v5  ;;  %v1356_v54 = vadd.f32 %v1355_v10, %v2837_v36  ;;  %v1244_v31 = vpop.f32.mrb[30].mxu0  ;;  %v1357_v14 = vpop.f32.mrb[30].mxu1 }
 0x23a   : > { %v1245_v15 = vadd.f32 %v1244_v31, %v2830_v52  ;;  %v1358_v28 = vadd.f32 %v1357_v14, %v2832_v7  ;;  %v1246_v26 = vpop.f32.mrb[31].mxu0  ;;  %v1359_v20 = vpop.f32.mrb[31].mxu1 }
 0x23b   : > { %v1839_v9 = vpack.c.bf16 %v1243_v30, %v1241_v12  ;;  %v1840_v48 = vpack.c.bf16 %v1356_v54, %v1354_v35  ;;  %v1247_v34 = vadd.f32 %v1246_v26, %v2835_v5  ;;  %v1360_v57 = vadd.f32 %v1359_v20, %v2837_v36 }
 0x23d   : > { %1582 = vst [vmem:[%s2848_s10 + $0xe0] sm:$0xff] %v1839_v9  ;;  %1583 = vst [vmem:[%s2848_s10 + $0xe8] sm:$0xff] %v1840_v48  ;;  %v1841_v52 = vpack.c.bf16 %v1247_v34, %v1245_v15  ;;  %v1842_v7 = vpack.c.bf16 %v1360_v57, %v1358_v28 }
 0x23f   : > { %1584 = vst [vmem:[%s2848_s10 + $0xf0] sm:$0xff] %v1841_v52  ;;  %1585 = vst [vmem:[%s2848_s10 + $0xf8] sm:$0xff] %v1842_v7 }
 0x240   : > { %2145 = shalt.err (!%p2142_p6)
}
 0x241   : > { %s2146_s8 = scalar_lea.hbm %s2939_s22, 4096  ;;  %s2150_s29 = scalar_lea.hbm %s2994_s5, 8192 }
 0x242   : > { %p2147_p12 = scmp.ne.s32.totalorder %s2939_s22, %s2146_s8  ;;  %p2151_p11 = scmp.lt.u32.totalorder %s2939_s22, %s2994_s5 }
 0x243   : > { %p2152_p7 = scmp.lt.u32.totalorder %s2150_s29, %s2146_s8  ;;  %p2154_p8 = scmp.lt.u32.totalorder %s2146_s8, %s2939_s22 }
 0x244   : > { %p2148_p13 = pnand %p2147_p12, %p3017_p4 }
 0x245   : > { %p2153_p3 = por %p2152_p7, %p2151_p11 }
 0x246   : > { %p2149_p1 = pneg %p2148_p13 }
 0x247   : > { %p2155_p5 = por %p2154_p8, %p2153_p3 }
 0x249   : > { %p2156_p10 = pnand %p2155_p5, %p2149_p1 }
 0x24b   : > { %2159 = shalt.err (!%p2156_p10)
}
 0x24c   : > { %s2212_s28 = smov 256   ;;  %s2213_s10 = smov 16  }
 0x24d   : > { %1855 = dma.vmem_to_hbm [thread:$0]  (%p3017_p4), %s2941_s16, 4096, %s2939_s22, %s1587_s23, %s2212_s28, %s2212_s28, %s2213_s10  }
 0x24e PF: > { %s1616_s15 = sand.u32 1, %s2190_s18   ;;  %p3018_p2 = scmp.ne.s32.totalorder %s3005_s6, 0 }
 0x24f   : > { %p3019_p0 = scmp.ge.s32.totalorder %s2202_s21, 2  ;;  %s1617_s14 = scalar_lea.sflag [#allocation4], %s1616_s15 }
 0x251   : > { %p1869_p9 = pnand %p3019_p0, %p3018_p2 }
 0x253   : > { %2185 = dma.done.wait (!%p1869_p9), %s1617_s14, 4096  }
 0x254   : > { %2187 = vsyncadd (!%p1869_p9), %s1617_s14, 4294963200  ;;  %s3020_s17 = sld [smem:[#allocation12_spill]]  ;;  %p19_p6 = scmp.ge.s32.totalorder %s2269_s24, 4  }
 0x255   : > { %s3021_s18 = smov %s2194_s19  ;;  %s3022_s19 = smov %s2198_s20 }
 0x256   : > { %s3024_s21 = smov %s2269_s24  ;;  %21 = sbr.rel (!%p19_p6) target bundleno = 8 (0x8), region = 93 }
 0x25a   : > { %s3023_s20 = smov %s3020_s17 }
 0x25d   :  { %1622 = vsyncpa [#allocation3], 1 }
 0x25e   :  { %1624 = vsyncpa [#allocation3 + $0x1], 1 }
 0x25f   :  { %1625 = vsyncpa [#allocation6], 1 }
 0x260   :  { %1626 = vsyncpa [#allocation4], 1 }
 0x261   :  { %1628 = vsyncpa [#allocation4 + $0x1], 1 }

</bundles_post_ra>
